<compile_context>
chip_gen: v5e
topology: v5e:2x2
jax: 0.10.0
libtpu: 0.0.40
codegen_flags: <defaults>
</compile_context>

<pallas_src>
import math

import jax
import jax.numpy as jnp
from jax import lax
from jax.experimental import pallas as pl
from jax.experimental.pallas import tpu as pltpu

D_MODEL = 768       # adapter_down in_features / adapter_up out_features
D_ADPT = 32         # bottleneck width / conv channels
KSIZE = 3           # conv kernel size (padding=1, stride=1)
LN_EPS = 1e-5       # nn.LayerNorm default
TARGET_ROWS = 512   # desired rows (M) per grid step


def _gelu(x):
    # exact (erf-based) GELU, matching nn.GELU() default
    return 0.5 * x * (1.0 + lax.erf(x * 0.7071067811865476))


def _seqs_per_tile(B, L):
    """Whole sequences per grid step: ~TARGET_ROWS rows, sublane-friendly."""
    per = max(1, TARGET_ROWS // L)
    per = min(per, B)
    step = 8 // math.gcd(L, 8)            # smallest seq count with rows % 8 == 0
    per = max(step, (per // step) * step)
    per = min(per, B)
    if (per * L) % 8 != 0:                # fall back: single block == full array
        per = B
    return per


def efficient_conv_pass(x, w_down, b_down, w_conv, b_conv, w_up, b_up,
                        gamma, beta):
    """x: (B, L, 768) f32.  w_down (768,32), w_conv (k,in,out)=(3,32,32),
    w_up (32,768); biases / gamma / beta are 1-D."""
    B, L, D = x.shape
    assert D == D_MODEL

    seqs = _seqs_per_tile(B, L)
    T = seqs * L                          # rows per grid step (whole sequences)
    R = B * L
    num_tiles = pl.cdiv(R, T)

    # flatten batch*seq into rows; channels stay on the lane axis (768 = 6*128)
    x2 = x.reshape(R, D_MODEL)
    b_down2 = b_down.reshape(1, D_ADPT)
    b_conv2 = b_conv.reshape(1, D_ADPT)
    b_up2 = b_up.reshape(1, D_MODEL)
    gamma2 = gamma.reshape(1, D_MODEL)
    beta2 = beta.reshape(1, D_MODEL)

    def kernel(x_ref, wd_ref, bd_ref, wc_ref, bc_ref, wu_ref, bu_ref,
               g_ref, bta_ref, o_ref):
        xt = x_ref[...]                                           # (T, 768)

        # adapter_down + GELU : (T,768) @ (768,32)
        down = _gelu(
            jnp.dot(xt, wd_ref[...], preferred_element_type=jnp.float32)
            + bd_ref[...])                                        # (T, 32)

        # Conv1d(32,32,k=3,pad=1) along the sequence axis, channels-last.
        # tap k=0 sees token l-1, k=1 sees l, k=2 sees l+1 (zero padded at
        # every sequence boundary -> mask on row % L).
        pos = lax.broadcasted_iota(jnp.int32, (T, D_ADPT), 0) % L
        prev = jnp.where(pos == 0, 0.0, pltpu.roll(down, shift=1, axis=0))
        nxt = jnp.where(pos == L - 1, 0.0,
                        pltpu.roll(down, shift=T - 1, axis=0))    # == shift -1
        conv = _gelu(
            jnp.dot(prev, wc_ref[0], preferred_element_type=jnp.float32)
            + jnp.dot(down, wc_ref[1], preferred_element_type=jnp.float32)
            + jnp.dot(nxt, wc_ref[2], preferred_element_type=jnp.float32)
            + bc_ref[...])                                        # (T, 32)

        # adapter_up + GELU : (T,32) @ (32,768)
        up = _gelu(
            jnp.dot(conv, wu_ref[...], preferred_element_type=jnp.float32)
            + bu_ref[...])                                        # (T, 768)

        # residual + single-pass LayerNorm over the last dim
        y = up + xt
        s = jnp.sum(y, axis=-1, keepdims=True)
        ss = jnp.sum(y * y, axis=-1, keepdims=True)
        mean = s * (1.0 / D_MODEL)
        var = ss * (1.0 / D_MODEL) - mean * mean
        inv = lax.rsqrt(var + LN_EPS)
        o_ref[...] = (y - mean) * inv * g_ref[...] + bta_ref[...]

    full = lambda shape: pl.BlockSpec(shape, lambda t: (0,) * len(shape))

    # only raise the scoped-VMEM limit when the row tile actually needs it;
    # cap at 64 MiB so the same code stays valid on v7x.
    block_bytes = T * D_MODEL * 4
    est = 6 * block_bytes + (2 << 20)     # in/out double-buffered + temporaries
    vmem_limit = None if est <= (32 << 20) else min(est, 64 << 20)

    out = pl.pallas_call(
        kernel,
        out_shape=jax.ShapeDtypeStruct((R, D_MODEL), jnp.float32),
        grid_spec=pltpu.PrefetchScalarGridSpec(
            num_scalar_prefetch=0,
            grid=(num_tiles,),
            in_specs=[
                pl.BlockSpec((T, D_MODEL), lambda t: (t, 0)),     # x rows
                full((D_MODEL, D_ADPT)),                          # w_down
                full((1, D_ADPT)),                                # b_down
                full((KSIZE, D_ADPT, D_ADPT)),                    # w_conv
                full((1, D_ADPT)),                                # b_conv
                full((D_ADPT, D_MODEL)),                          # w_up
                full((1, D_MODEL)),                               # b_up
                full((1, D_MODEL)),                               # gamma
                full((1, D_MODEL)),                               # beta
            ],
            out_specs=pl.BlockSpec((T, D_MODEL), lambda t: (t, 0)),
        ),
        compiler_params=pltpu.CompilerParams(
            dimension_semantics=("parallel",),
            vmem_limit_bytes=vmem_limit),
    )(x2, w_down, b_down2, w_conv, b_conv2, w_up, b_up2, gamma2, beta2)

    return out.reshape(B, L, D_MODEL)


if __name__ == "__main__":
    key = jax.random.PRNGKey(0)
    kx, k1, k2, k3, k4, k5, k6 = jax.random.split(key, 7)

    B, L = 2, 8
    x = jax.random.normal(kx, (B, L, D_MODEL), jnp.float32)

    # deterministic synthetic parameters (PyTorch shapes noted)
    w_down = jax.random.normal(k1, (D_MODEL, D_ADPT), jnp.float32) * 0.02   # Linear(768,32).weight.T
    b_down = jax.random.normal(k2, (D_ADPT,), jnp.float32) * 0.02
    # Conv1d weight is (out=32, in=32, k=3) in PyTorch; store as (k, in, out)
    w_conv_pt = jax.random.normal(k3, (D_ADPT, D_ADPT, KSIZE), jnp.float32) * 0.05
    w_conv = jnp.transpose(w_conv_pt, (2, 1, 0))                            # (k, in, out)
    b_conv = jax.random.normal(k4, (D_ADPT,), jnp.float32) * 0.02
    w_up = jax.random.normal(k5, (D_ADPT, D_MODEL), jnp.float32) * 0.02     # Linear(32,768).weight.T
    b_up = jax.random.normal(k6, (D_MODEL,), jnp.float32) * 0.02
    gamma = jnp.ones((D_MODEL,), jnp.float32)                               # LayerNorm defaults
    beta = jnp.zeros((D_MODEL,), jnp.float32)

    out = efficient_conv_pass(x, w_down, b_down, w_conv, b_conv,
                              w_up, b_up, gamma, beta)
    jax.block_until_ready(out)

    # lightweight sanity check vs. pure-JAX reference
    def ref(x):
        down = _gelu(x @ w_down + b_down)                        # (B,L,32)
        padded = jnp.pad(down, ((0, 0), (1, 1), (0, 0)))
        conv = (padded[:, :-2] @ w_conv[0]
                + padded[:, 1:-1] @ w_conv[1]
                + padded[:, 2:] @ w_conv[2] + b_conv)
        conv = _gelu(conv)
        up = _gelu(conv @ w_up + b_up)
        y = up + x
        mu = y.mean(-1, keepdims=True)
        var = ((y - mu) ** 2).mean(-1, keepdims=True)
        return (y - mu) / jnp.sqrt(var + LN_EPS) * gamma + beta

    assert jnp.allclose(out, ref(x), atol=1e-4, rtol=1e-4)
    print("KERNEL_OK")
</pallas_src>

<mosaic_0001>
module attributes {stable_mosaic.version = 11 : i64} {
  func.func @kernel(%arg0: i32, %arg1: memref<16x768xf32, #tpu.memory_space<vmem>>, %arg2: memref<768x32xf32, #tpu.memory_space<vmem>>, %arg3: memref<1x32xf32, #tpu.memory_space<vmem>>, %arg4: memref<3x32x32xf32, #tpu.memory_space<vmem>>, %arg5: memref<1x32xf32, #tpu.memory_space<vmem>>, %arg6: memref<32x768xf32, #tpu.memory_space<vmem>>, %arg7: memref<1x768xf32, #tpu.memory_space<vmem>>, %arg8: memref<1x768xf32, #tpu.memory_space<vmem>>, %arg9: memref<1x768xf32, #tpu.memory_space<vmem>>, %arg10: memref<16x768xf32, #tpu.memory_space<vmem>>) attributes {dimension_semantics = [#tpu.dimension_semantics<parallel>], iteration_bounds = array<i64: 1>, scalar_prefetch = 0 : i64, scratch_operands = 0 : i64, tpu.core_type = #tpu.core_type<tc>, window_params = [{transform_indices = @transform_0, window_bounds = array<i64: 16, 768>}, {pipeline_mode = #tpu.pipeline_mode<synchronous>, transform_indices = @transform_1, window_bounds = array<i64: 768, 32>}, {pipeline_mode = #tpu.pipeline_mode<synchronous>, transform_indices = @transform_2, window_bounds = array<i64: 1, 32>}, {pipeline_mode = #tpu.pipeline_mode<synchronous>, transform_indices = @transform_3, window_bounds = array<i64: 3, 32, 32>}, {pipeline_mode = #tpu.pipeline_mode<synchronous>, transform_indices = @transform_4, window_bounds = array<i64: 1, 32>}, {pipeline_mode = #tpu.pipeline_mode<synchronous>, transform_indices = @transform_5, window_bounds = array<i64: 32, 768>}, {pipeline_mode = #tpu.pipeline_mode<synchronous>, transform_indices = @transform_6, window_bounds = array<i64: 1, 768>}, {pipeline_mode = #tpu.pipeline_mode<synchronous>, transform_indices = @transform_7, window_bounds = array<i64: 1, 768>}, {pipeline_mode = #tpu.pipeline_mode<synchronous>, transform_indices = @transform_8, window_bounds = array<i64: 1, 768>}, {transform_indices = @transform_9, window_bounds = array<i64: 16, 768>}]} {
    %c0 = arith.constant 0 : index
    %c0_0 = arith.constant 0 : index
    %0 = vector.load %arg1[%c0, %c0_0] : memref<16x768xf32, #tpu.memory_space<vmem>>, vector<16x768xf32>
    %c0_1 = arith.constant 0 : index
    %c0_2 = arith.constant 0 : index
    %1 = vector.load %arg2[%c0_1, %c0_2] : memref<768x32xf32, #tpu.memory_space<vmem>>, vector<768x32xf32>
    %cst = arith.constant dense<0.000000e+00> : vector<16x32xf32>
    %2 = tpu.matmul %0, %1, %cst {dimension_numbers = #tpu.dot_dimension_numbers<[1], [0], [0], [1], [0, 0, 1, 1], [], []>} : vector<16x768xf32>, vector<768x32xf32>, vector<16x32xf32> -> vector<16x32xf32>
    %c0_3 = arith.constant 0 : index
    %c0_4 = arith.constant 0 : index
    %3 = vector.load %arg3[%c0_3, %c0_4] : memref<1x32xf32, #tpu.memory_space<vmem>>, vector<1x32xf32>
    %4 = vector.broadcast %3 : vector<1x32xf32> to vector<16x32xf32>
    %5 = arith.addf %2, %4 : vector<16x32xf32>
    %cst_5 = arith.constant 5.000000e-01 : f32
    %6 = vector.broadcast %cst_5 : f32 to vector<16x32xf32>
    %7 = arith.mulf %6, %5 : vector<16x32xf32>
    %cst_6 = arith.constant 0.707106769 : f32
    %8 = vector.broadcast %cst_6 : f32 to vector<16x32xf32>
    %9 = arith.mulf %5, %8 : vector<16x32xf32>
    %10 = math.erf %9 : vector<16x32xf32>
    %cst_7 = arith.constant 1.000000e+00 : f32
    %11 = vector.broadcast %cst_7 : f32 to vector<16x32xf32>
    %12 = arith.addf %11, %10 : vector<16x32xf32>
    %13 = arith.mulf %7, %12 : vector<16x32xf32>
    %14 = tpu.iota {dimensions = array<i32: 0>} : vector<16x32xi32>
    %c8_i32 = arith.constant 8 : i32
    %c0_i32 = arith.constant 0 : i32
    %15 = arith.cmpi eq, %c8_i32, %c0_i32 : i32
    %c1_i32 = arith.constant 1 : i32
    %16 = arith.select %15, %c1_i32, %c8_i32 : i32
    %17 = vector.broadcast %16 : i32 to vector<16x32xi32>
    %18 = arith.remsi %14, %17 : vector<16x32xi32>
    %c0_i32_8 = arith.constant 0 : i32
    %19 = vector.broadcast %c0_i32_8 : i32 to vector<16x32xi32>
    %20 = arith.cmpi ne, %18, %19 : vector<16x32xi32>
    %c0_i32_9 = arith.constant 0 : i32
    %21 = vector.broadcast %c0_i32_9 : i32 to vector<16x32xi32>
    %22 = arith.cmpi slt, %18, %21 : vector<16x32xi32>
    %c0_i32_10 = arith.constant 0 : i32
    %23 = arith.cmpi slt, %16, %c0_i32_10 : i32
    %24 = vector.broadcast %23 : i1 to vector<16x32xi1>
    %25 = vector.broadcast %24 : vector<16x32xi1> to vector<16x32xi1>
    %26 = arith.xori %22, %25 : vector<16x32xi1>
    %27 = arith.andi %26, %20 : vector<16x32xi1>
    %28 = vector.broadcast %16 : i32 to vector<16x32xi32>
    %29 = arith.addi %18, %28 : vector<16x32xi32>
    %30 = arith.select %27, %29, %18 : vector<16x32xi1>, vector<16x32xi32>
    %c0_i32_11 = arith.constant 0 : i32
    %31 = vector.broadcast %c0_i32_11 : i32 to vector<16x32xi32>
    %32 = arith.cmpi eq, %30, %31 : vector<16x32xi32>
    %c1_i32_12 = arith.constant 1 : i32
    %33 = tpu.dynamic_rotate %13 by %c1_i32_12 dim 0 : vector<16x32xf32>, i32 -> vector<16x32xf32>
    %cst_13 = arith.constant 0.000000e+00 : f32
    %34 = vector.broadcast %cst_13 : f32 to vector<16x32xf32>
    %35 = arith.select %32, %34, %33 : vector<16x32xi1>, vector<16x32xf32>
    %c7_i32 = arith.constant 7 : i32
    %36 = vector.broadcast %c7_i32 : i32 to vector<16x32xi32>
    %37 = arith.cmpi eq, %30, %36 : vector<16x32xi32>
    %c15_i32 = arith.constant 15 : i32
    %38 = tpu.dynamic_rotate %13 by %c15_i32 dim 0 : vector<16x32xf32>, i32 -> vector<16x32xf32>
    %cst_14 = arith.constant 0.000000e+00 : f32
    %39 = vector.broadcast %cst_14 : f32 to vector<16x32xf32>
    %40 = arith.select %37, %39, %38 : vector<16x32xi1>, vector<16x32xf32>
    %c0_15 = arith.constant 0 : index
    %c0_16 = arith.constant 0 : index
    %c0_17 = arith.constant 0 : index
    %41 = vector.load %arg4[%c0_15, %c0_16, %c0_17] : memref<3x32x32xf32, #tpu.memory_space<vmem>>, vector<1x32x32xf32>
    %42 = vector.shape_cast %41 : vector<1x32x32xf32> to vector<32x32xf32>
    %cst_18 = arith.constant dense<0.000000e+00> : vector<16x32xf32>
    %43 = tpu.matmul %35, %42, %cst_18 {dimension_numbers = #tpu.dot_dimension_numbers<[1], [0], [0], [1], [0, 0, 1, 1], [], []>} : vector<16x32xf32>, vector<32x32xf32>, vector<16x32xf32> -> vector<16x32xf32>
    %c1 = arith.constant 1 : index
    %c0_19 = arith.constant 0 : index
    %c0_20 = arith.constant 0 : index
    %44 = vector.load %arg4[%c1, %c0_19, %c0_20] : memref<3x32x32xf32, #tpu.memory_space<vmem>>, vector<1x32x32xf32>
    %45 = vector.shape_cast %44 : vector<1x32x32xf32> to vector<32x32xf32>
    %cst_21 = arith.constant dense<0.000000e+00> : vector<16x32xf32>
    %46 = tpu.matmul %13, %45, %cst_21 {dimension_numbers = #tpu.dot_dimension_numbers<[1], [0], [0], [1], [0, 0, 1, 1], [], []>} : vector<16x32xf32>, vector<32x32xf32>, vector<16x32xf32> -> vector<16x32xf32>
    %47 = arith.addf %43, %46 : vector<16x32xf32>
    %c2 = arith.constant 2 : index
    %c0_22 = arith.constant 0 : index
    %c0_23 = arith.constant 0 : index
    %48 = vector.load %arg4[%c2, %c0_22, %c0_23] : memref<3x32x32xf32, #tpu.memory_space<vmem>>, vector<1x32x32xf32>
    %49 = vector.shape_cast %48 : vector<1x32x32xf32> to vector<32x32xf32>
    %cst_24 = arith.constant dense<0.000000e+00> : vector<16x32xf32>
    %50 = tpu.matmul %40, %49, %cst_24 {dimension_numbers = #tpu.dot_dimension_numbers<[1], [0], [0], [1], [0, 0, 1, 1], [], []>} : vector<16x32xf32>, vector<32x32xf32>, vector<16x32xf32> -> vector<16x32xf32>
    %51 = arith.addf %47, %50 : vector<16x32xf32>
    %c0_25 = arith.constant 0 : index
    %c0_26 = arith.constant 0 : index
    %52 = vector.load %arg5[%c0_25, %c0_26] : memref<1x32xf32, #tpu.memory_space<vmem>>, vector<1x32xf32>
    %53 = vector.broadcast %52 : vector<1x32xf32> to vector<16x32xf32>
    %54 = arith.addf %51, %53 : vector<16x32xf32>
    %cst_27 = arith.constant 5.000000e-01 : f32
    %55 = vector.broadcast %cst_27 : f32 to vector<16x32xf32>
    %56 = arith.mulf %55, %54 : vector<16x32xf32>
    %cst_28 = arith.constant 0.707106769 : f32
    %57 = vector.broadcast %cst_28 : f32 to vector<16x32xf32>
    %58 = arith.mulf %54, %57 : vector<16x32xf32>
    %59 = math.erf %58 : vector<16x32xf32>
    %cst_29 = arith.constant 1.000000e+00 : f32
    %60 = vector.broadcast %cst_29 : f32 to vector<16x32xf32>
    %61 = arith.addf %60, %59 : vector<16x32xf32>
    %62 = arith.mulf %56, %61 : vector<16x32xf32>
    %c0_30 = arith.constant 0 : index
    %c0_31 = arith.constant 0 : index
    %63 = vector.load %arg6[%c0_30, %c0_31] : memref<32x768xf32, #tpu.memory_space<vmem>>, vector<32x768xf32>
    %cst_32 = arith.constant dense<0.000000e+00> : vector<16x768xf32>
    %64 = tpu.matmul %62, %63, %cst_32 {dimension_numbers = #tpu.dot_dimension_numbers<[1], [0], [0], [1], [0, 0, 1, 1], [], []>} : vector<16x32xf32>, vector<32x768xf32>, vector<16x768xf32> -> vector<16x768xf32>
    %c0_33 = arith.constant 0 : index
    %c0_34 = arith.constant 0 : index
    %65 = vector.load %arg7[%c0_33, %c0_34] : memref<1x768xf32, #tpu.memory_space<vmem>>, vector<1x768xf32>
    %66 = vector.broadcast %65 : vector<1x768xf32> to vector<16x768xf32>
    %67 = arith.addf %64, %66 : vector<16x768xf32>
    %cst_35 = arith.constant 5.000000e-01 : f32
    %68 = vector.broadcast %cst_35 : f32 to vector<16x768xf32>
    %69 = arith.mulf %68, %67 : vector<16x768xf32>
    %cst_36 = arith.constant 0.707106769 : f32
    %70 = vector.broadcast %cst_36 : f32 to vector<16x768xf32>
    %71 = arith.mulf %67, %70 : vector<16x768xf32>
    %72 = math.erf %71 : vector<16x768xf32>
    %cst_37 = arith.constant 1.000000e+00 : f32
    %73 = vector.broadcast %cst_37 : f32 to vector<16x768xf32>
    %74 = arith.addf %73, %72 : vector<16x768xf32>
    %75 = arith.mulf %69, %74 : vector<16x768xf32>
    %76 = arith.addf %75, %0 : vector<16x768xf32>
    %cst_38 = arith.constant dense<0.000000e+00> : vector<16xf32>
    %77 = vector.multi_reduction <add>, %76, %cst_38 [1] : vector<16x768xf32> to vector<16xf32>
    %78 = vector.shape_cast %77 : vector<16xf32> to vector<16x1xf32>
    %79 = arith.mulf %76, %76 : vector<16x768xf32>
    %cst_39 = arith.constant dense<0.000000e+00> : vector<16xf32>
    %80 = vector.multi_reduction <add>, %79, %cst_39 [1] : vector<16x768xf32> to vector<16xf32>
    %81 = vector.shape_cast %80 : vector<16xf32> to vector<16x1xf32>
    %cst_40 = arith.constant 0.00130208337 : f32
    %82 = vector.broadcast %cst_40 : f32 to vector<16x1xf32>
    %83 = arith.mulf %78, %82 : vector<16x1xf32>
    %cst_41 = arith.constant 0.00130208337 : f32
    %84 = vector.broadcast %cst_41 : f32 to vector<16x1xf32>
    %85 = arith.mulf %81, %84 : vector<16x1xf32>
    %86 = arith.mulf %83, %83 : vector<16x1xf32>
    %87 = arith.subf %85, %86 : vector<16x1xf32>
    %cst_42 = arith.constant 9.99999974E-6 : f32
    %88 = vector.broadcast %cst_42 : f32 to vector<16x1xf32>
    %89 = arith.addf %87, %88 : vector<16x1xf32>
    %90 = math.rsqrt %89 : vector<16x1xf32>
    %91 = vector.broadcast %83 : vector<16x1xf32> to vector<16x768xf32>
    %92 = arith.subf %76, %91 : vector<16x768xf32>
    %93 = vector.broadcast %90 : vector<16x1xf32> to vector<16x768xf32>
    %94 = arith.mulf %92, %93 : vector<16x768xf32>
    %c0_43 = arith.constant 0 : index
    %c0_44 = arith.constant 0 : index
    %95 = vector.load %arg8[%c0_43, %c0_44] : memref<1x768xf32, #tpu.memory_space<vmem>>, vector<1x768xf32>
    %96 = vector.broadcast %95 : vector<1x768xf32> to vector<16x768xf32>
    %97 = arith.mulf %94, %96 : vector<16x768xf32>
    %c0_45 = arith.constant 0 : index
    %c0_46 = arith.constant 0 : index
    %98 = vector.load %arg9[%c0_45, %c0_46] : memref<1x768xf32, #tpu.memory_space<vmem>>, vector<1x768xf32>
    %99 = vector.broadcast %98 : vector<1x768xf32> to vector<16x768xf32>
    %100 = arith.addf %97, %99 : vector<16x768xf32>
    %c0_47 = arith.constant 0 : index
    %c0_48 = arith.constant 0 : index
    %101 = vector.load %arg10[%c0_47, %c0_48] : memref<16x768xf32, #tpu.memory_space<vmem>>, vector<16x768xf32>
    tpu.vector_store %arg10[%c0_47, %c0_48], %100 {strides = array<i32>} : memref<16x768xf32, #tpu.memory_space<vmem>>, vector<16x768xf32>,
    return
  }
  func.func @transform_0(%arg0: i32) -> (i32, i32) {
    %c0_i32 = arith.constant 0 : i32
    %c0_i32_0 = arith.constant 0 : i32
    return %arg0, %c0_i32 : i32, i32
  }
  func.func @transform_1(%arg0: i32) -> (i32, i32) {
    %c0_i32 = arith.constant 0 : i32
    %c0_i32_0 = arith.constant 0 : i32
    %c0_i32_1 = arith.constant 0 : i32
    return %c0_i32, %c0_i32_0 : i32, i32
  }
  func.func @transform_2(%arg0: i32) -> (i32, i32) {
    %c0_i32 = arith.constant 0 : i32
    %c0_i32_0 = arith.constant 0 : i32
    %c0_i32_1 = arith.constant 0 : i32
    return %c0_i32, %c0_i32_0 : i32, i32
  }
  func.func @transform_3(%arg0: i32) -> (i32, i32, i32) {
    %c0_i32 = arith.constant 0 : i32
    %c0_i32_0 = arith.constant 0 : i32
    %c0_i32_1 = arith.constant 0 : i32
    %c0_i32_2 = arith.constant 0 : i32
    return %c0_i32, %c0_i32_0, %c0_i32_1 : i32, i32, i32
  }
  func.func @transform_4(%arg0: i32) -> (i32, i32) {
    %c0_i32 = arith.constant 0 : i32
    %c0_i32_0 = arith.constant 0 : i32
    %c0_i32_1 = arith.constant 0 : i32
    return %c0_i32, %c0_i32_0 : i32, i32
  }
  func.func @transform_5(%arg0: i32) -> (i32, i32) {
    %c0_i32 = arith.constant 0 : i32
    %c0_i32_0 = arith.constant 0 : i32
    %c0_i32_1 = arith.constant 0 : i32
    return %c0_i32, %c0_i32_0 : i32, i32
  }
  func.func @transform_6(%arg0: i32) -> (i32, i32) {
    %c0_i32 = arith.constant 0 : i32
    %c0_i32_0 = arith.constant 0 : i32
    %c0_i32_1 = arith.constant 0 : i32
    return %c0_i32, %c0_i32_0 : i32, i32
  }
  func.func @transform_7(%arg0: i32) -> (i32, i32) {
    %c0_i32 = arith.constant 0 : i32
    %c0_i32_0 = arith.constant 0 : i32
    %c0_i32_1 = arith.constant 0 : i32
    return %c0_i32, %c0_i32_0 : i32, i32
  }
  func.func @transform_8(%arg0: i32) -> (i32, i32) {
    %c0_i32 = arith.constant 0 : i32
    %c0_i32_0 = arith.constant 0 : i32
    %c0_i32_1 = arith.constant 0 : i32
    return %c0_i32, %c0_i32_0 : i32, i32
  }
  func.func @transform_9(%arg0: i32) -> (i32, i32) {
    %c0_i32 = arith.constant 0 : i32
    %c0_i32_0 = arith.constant 0 : i32
    return %arg0, %c0_i32 : i32, i32
  }
}

</mosaic_0001>

<bundles_post_ra>
// kernel: tpu_custom_call.1
= control target key start
LH: loop header
LB: loop body
LE: loop exit
PB: predicated region body
PF: predicated region fallthrough
CT: control target
= control target key end

     0   :  { %s2968_s0 = inlined_call_operand.vmem [shape: f32[16,768], index: 0, kind: input, shape index: {}]   ;;  %s2969_s1 = inlined_call_operand.vmem [shape: f32[768,32], index: 1, kind: input, shape index: {}]   ;;  %s2970_s2 = inlined_call_operand.vmem [shape: f32[1,32], index: 2, kind: input, shape index: {}]   ;;  %s2971_s3 = inlined_call_operand.vmem [shape: f32[3,32,32], index: 3, kind: input, shape index: {}]   ;;  %s2972_s4 = inlined_call_operand.vmem [shape: f32[1,32], index: 4, kind: input, shape index: {}]   ;;  %s2973_s5 = inlined_call_operand.vmem [shape: f32[32,768], index: 5, kind: input, shape index: {}]   ;;  %s2974_s6 = inlined_call_operand.vmem [shape: f32[1,768], index: 6, kind: input, shape index: {}]   ;;  %s2975_s7 = inlined_call_operand.vmem [shape: f32[1,768], index: 7, kind: input, shape index: {}]   ;;  %s2976_s8 = inlined_call_operand.vmem [shape: f32[1,768], index: 8, kind: input, shape index: {}]   ;;  %s2977_s9 = inlined_call_operand.hbm [shape: f32[16,768], index: 9, kind: output, shape index: {}]  }
   0x1   :  { %v60_v0 = vld [vmem:[%s2969_s1 + $0x78] sm:$0xff]  ;;  %v59_v1 = vld [vmem:[%s2969_s1 + $0x70] sm:$0xff]  ;;  %v58_v4 = vld [vmem:[%s2969_s1 + $0x68] sm:$0xff] }
   0x2   :  { %v76_v2 = vld [vmem:[%s2969_s1 + $0xf8] sm:$0xff]  ;;  %145 = vmatpush.msra.mxu0 %v60_v0  ;;  %v75_v3 = vld [vmem:[%s2969_s1 + $0xf0] sm:$0xff]  ;;  %v74_v5 = vld [vmem:[%s2969_s1 + $0xe8] sm:$0xff] }
   0x3   :  { %168 = vmatpush.msra.mxu1 %v76_v2  ;;  %v57_v6 = vld [vmem:[%s2969_s1 + $0x60] sm:$0xff]  ;;  %v92_v8 = vld [vmem:[%s2969_s1 + $0x178] sm:$0xff]  ;;  %v91_v9 = vld [vmem:[%s2969_s1 + $0x170] sm:$0xff] }
   0x4   :  { %146 = vmatpush.msra.mxu0 %v59_v1  ;;  %v73_v7 = vld [vmem:[%s2969_s1 + $0xe0] sm:$0xff]  ;;  %v108_v10 = vld [vmem:[%s2969_s1 + $0x1f8] sm:$0xff]  ;;  %191 = vmatpush.msra.mxu2 %v92_v8  ;;  %v90_v13 = vld [vmem:[%s2969_s1 + $0x168] sm:$0xff] }
   0x5   :  { %169 = vmatpush.msra.mxu1 %v75_v3  ;;  %v56_v11 = vld [vmem:[%s2969_s1 + $0x58] sm:$0xff]  ;;  %214 = vmatpush.msra.mxu3 %v108_v10  ;;  %v107_v14 = vld [vmem:[%s2969_s1 + $0x1f0] sm:$0xff]  ;;  %v106_v17 = vld [vmem:[%s2969_s1 + $0x1e8] sm:$0xff] }
   0x6   :  { %147 = vmatpush.msra.mxu0 %v58_v4  ;;  %v72_v12 = vld [vmem:[%s2969_s1 + $0xd8] sm:$0xff]  ;;  %v55_v15 = vld [vmem:[%s2969_s1 + $0x50] sm:$0xff]  ;;  %192 = vmatpush.msra.mxu2 %v91_v9  ;;  %v89_v18 = vld [vmem:[%s2969_s1 + $0x160] sm:$0xff] }
   0x7   :  { %170 = vmatpush.msra.mxu1 %v74_v5  ;;  %v71_v16 = vld [vmem:[%s2969_s1 + $0xd0] sm:$0xff]  ;;  %215 = vmatpush.msra.mxu3 %v107_v14  ;;  %v105_v19 = vld [vmem:[%s2969_s1 + $0x1e0] sm:$0xff]  ;;  %v54_v20 = vld [vmem:[%s2969_s1 + $0x48] sm:$0xff] }
   0x8   :  { %148 = vmatpush.msra.mxu0 %v57_v6  ;;  %v70_v21 = vld [vmem:[%s2969_s1 + $0xc8] sm:$0xff]  ;;  %193 = vmatpush.msra.mxu2 %v90_v13  ;;  %v88_v22 = vld [vmem:[%s2969_s1 + $0x158] sm:$0xff]  ;;  %v53_v24 = vld [vmem:[%s2969_s1 + $0x40] sm:$0xff] }
   0x9   :  { %171 = vmatpush.msra.mxu1 %v73_v7  ;;  %216 = vmatpush.msra.mxu3 %v106_v17  ;;  %v104_v23 = vld [vmem:[%s2969_s1 + $0x1d8] sm:$0xff]  ;;  %v69_v25 = vld [vmem:[%s2969_s1 + $0xc0] sm:$0xff]  ;;  %v87_v26 = vld [vmem:[%s2969_s1 + $0x150] sm:$0xff] }
   0xa   :  { %149 = vmatpush.msra.mxu0 %v56_v11  ;;  %194 = vmatpush.msra.mxu2 %v89_v18  ;;  %v103_v27 = vld [vmem:[%s2969_s1 + $0x1d0] sm:$0xff]  ;;  %v52_v28 = vld [vmem:[%s2969_s1 + $0x38] sm:$0xff]  ;;  %v86_v30 = vld [vmem:[%s2969_s1 + $0x148] sm:$0xff] }
   0xb   :  { %172 = vmatpush.msra.mxu1 %v72_v12  ;;  %217 = vmatpush.msra.mxu3 %v105_v19  ;;  %v68_v29 = vld [vmem:[%s2969_s1 + $0xb8] sm:$0xff]  ;;  %v102_v31 = vld [vmem:[%s2969_s1 + $0x1c8] sm:$0xff]  ;;  %v51_v32 = vld [vmem:[%s2969_s1 + $0x30] sm:$0xff] }
   0xc   :  { %150 = vmatpush.msra.mxu0 %v55_v15  ;;  %195 = vmatpush.msra.mxu2 %v88_v22  ;;  %v67_v33 = vld [vmem:[%s2969_s1 + $0xb0] sm:$0xff]  ;;  %v85_v34 = vld [vmem:[%s2969_s1 + $0x140] sm:$0xff]  ;;  %v50_v36 = vld [vmem:[%s2969_s1 + $0x28] sm:$0xff] }
   0xd   :  { %173 = vmatpush.msra.mxu1 %v71_v16  ;;  %218 = vmatpush.msra.mxu3 %v104_v23  ;;  %v101_v35 = vld [vmem:[%s2969_s1 + $0x1c0] sm:$0xff]  ;;  %v66_v37 = vld [vmem:[%s2969_s1 + $0xa8] sm:$0xff]  ;;  %v84_v38 = vld [vmem:[%s2969_s1 + $0x138] sm:$0xff] }
   0xe   :  { %151 = vmatpush.msra.mxu0 %v54_v20  ;;  %196 = vmatpush.msra.mxu2 %v87_v26  ;;  %v100_v39 = vld [vmem:[%s2969_s1 + $0x1b8] sm:$0xff]  ;;  %v49_v40 = vld [vmem:[%s2969_s1 + $0x20] sm:$0xff]  ;;  %v83_v42 = vld [vmem:[%s2969_s1 + $0x130] sm:$0xff] }
   0xf   :  { %174 = vmatpush.msra.mxu1 %v70_v21  ;;  %219 = vmatpush.msra.mxu3 %v103_v27  ;;  %v65_v41 = vld [vmem:[%s2969_s1 + $0xa0] sm:$0xff]  ;;  %v99_v43 = vld [vmem:[%s2969_s1 + $0x1b0] sm:$0xff]  ;;  %v48_v44 = vld [vmem:[%s2969_s1 + $0x18] sm:$0xff] }
  0x10   :  { %152 = vmatpush.msra.mxu0 %v53_v24  ;;  %197 = vmatpush.msra.mxu2 %v86_v30  ;;  %v64_v45 = vld [vmem:[%s2969_s1 + $0x98] sm:$0xff]  ;;  %v82_v46 = vld [vmem:[%s2969_s1 + $0x128] sm:$0xff]  ;;  %v47_v48 = vld [vmem:[%s2969_s1 + $0x10] sm:$0xff] }
  0x11   :  { %175 = vmatpush.msra.mxu1 %v69_v25  ;;  %220 = vmatpush.msra.mxu3 %v102_v31  ;;  %v98_v47 = vld [vmem:[%s2969_s1 + $0x1a8] sm:$0xff]  ;;  %v63_v49 = vld [vmem:[%s2969_s1 + $0x90] sm:$0xff]  ;;  %v81_v50 = vld [vmem:[%s2969_s1 + $0x120] sm:$0xff] }
  0x12   :  { %153 = vmatpush.msra.mxu0 %v52_v28  ;;  %198 = vmatpush.msra.mxu2 %v85_v34  ;;  %v97_v51 = vld [vmem:[%s2969_s1 + $0x1a0] sm:$0xff]  ;;  %v46_v52 = vld [vmem:[%s2969_s1 + $0x8] sm:$0xff]  ;;  %v80_v54 = vld [vmem:[%s2969_s1 + $0x118] sm:$0xff] }
  0x13   :  { %176 = vmatpush.msra.mxu1 %v68_v29  ;;  %221 = vmatpush.msra.mxu3 %v101_v35  ;;  %v62_v53 = vld [vmem:[%s2969_s1 + $0x88] sm:$0xff]  ;;  %v96_v55 = vld [vmem:[%s2969_s1 + $0x198] sm:$0xff]  ;;  %v45_v56 = vld [vmem:[%s2969_s1] sm:$0xff] }
  0x14   :  { %154 = vmatpush.msra.mxu0 %v51_v32  ;;  %199 = vmatpush.msra.mxu2 %v84_v38  ;;  %v61_v57 = vld [vmem:[%s2969_s1 + $0x80] sm:$0xff]  ;;  %v124_v58 = vld [vmem:[%s2969_s1 + $0x278] sm:$0xff]  ;;  %v79_v60 = vld [vmem:[%s2969_s1 + $0x110] sm:$0xff] }
  0x15   :  { %177 = vmatpush.msra.mxu1 %v67_v33  ;;  %222 = vmatpush.msra.mxu3 %v100_v39  ;;  %v140_v59 = vld [vmem:[%s2969_s1 + $0x2f8] sm:$0xff]  ;;  %v95_v61 = vld [vmem:[%s2969_s1 + $0x190] sm:$0xff]  ;;  %v78_v0 = vld [vmem:[%s2969_s1 + $0x108] sm:$0xff] }
  0x16   :  { %155 = vmatpush.msra.mxu0 %v50_v36  ;;  %200 = vmatpush.msra.mxu2 %v83_v42  ;;  %v123_v62 = vld [vmem:[%s2969_s1 + $0x270] sm:$0xff]  ;;  %v94_v1 = vld [vmem:[%s2969_s1 + $0x188] sm:$0xff]  ;;  %v121_v4 = vld [vmem:[%s2969_s1 + $0x260] sm:$0xff] }
  0x17   :  { %178 = vmatpush.msra.mxu1 %v66_v37  ;;  %223 = vmatpush.msra.mxu3 %v99_v43  ;;  %v139_v63 = vld [vmem:[%s2969_s1 + $0x2f0] sm:$0xff]  ;;  %v122_v2 = vld [vmem:[%s2969_s1 + $0x268] sm:$0xff]  ;;  %v77_v5 = vld [vmem:[%s2969_s1 + $0x100] sm:$0xff] }
  0x18   :  { %156 = vmatpush.msra.mxu0 %v49_v40  ;;  %201 = vmatpush.msra.mxu2 %v82_v46  ;;  %v138_v3 = vld [vmem:[%s2969_s1 + $0x2e8] sm:$0xff]  ;;  %v93_v6 = vld [vmem:[%s2969_s1 + $0x180] sm:$0xff]  ;;  %v35_v8 = vld [vmem:[%s2968_s0 + $0x10] sm:$0xff] }
  0x19   :  { %179 = vmatpush.msra.mxu1 %v65_v41  ;;  %224 = vmatpush.msra.mxu3 %v98_v47  ;;  %v137_v7 = vld [vmem:[%s2969_s1 + $0x2e0] sm:$0xff] }
  0x1a   :  { %157 = vmatpush.msra.mxu0 %v48_v44  ;;  %202 = vmatpush.msra.mxu2 %v81_v50  ;;  %v33_v9 = vld [vmem:[%s2968_s0] sm:$0xff] }
  0x1b   :  { %180 = vmatpush.msra.mxu1 %v64_v45  ;;  %225 = vmatpush.msra.mxu3 %v97_v51 }
  0x1c   :  { %158 = vmatpush.msra.mxu0 %v47_v48  ;;  %203 = vmatpush.msra.mxu2 %v80_v54 }
  0x1d   :  { %181 = vmatpush.msra.mxu1 %v63_v49  ;;  %226 = vmatpush.msra.mxu3 %v96_v55 }
  0x1e   :  { %159 = vmatpush.msra.mxu0 %v46_v52  ;;  %204 = vmatpush.msra.mxu2 %v79_v60 }
  0x1f   :  { %182 = vmatpush.msra.mxu1 %v62_v53  ;;  %227 = vmatpush.msra.mxu3 %v95_v61 }
  0x20   :  { %160 = vmatpush.msra.mxu0 %v45_v56  ;;  %205 = vmatpush.msra.mxu2 %v78_v0 }
  0x21   :  { %183 = vmatpush.msra.mxu1 %v61_v57  ;;  %228 = vmatpush.msra.mxu3 %v94_v1 }
  0x22   :  { %237 = vmatpush.msrb.mxu0 %v124_v58 }
  0x23   :  { %260 = vmatpush.msrb.mxu1 %v140_v59 }
  0x24   :  { %238 = vmatpush.msrb.mxu0 %v123_v62 }
  0x25   :  { %261 = vmatpush.msrb.mxu1 %v139_v63 }
  0x26   :  { %239 = vmatpush.msrb.mxu0 %v122_v2 }
  0x27   :  { %262 = vmatpush.msrb.mxu1 %v138_v3 }
  0x28   :  { %14 = vsyncpa [#allocation3], 0  ;;  %v120_v10 = vld [vmem:[%s2969_s1 + $0x258] sm:$0xff]  ;;  %206 = vmatpush.msra.mxu2 %v77_v5  ;;  %229 = vmatpush.msra.mxu3 %v93_v6  ;;  %v34_v13 = vld [vmem:[%s2968_s0 + $0x8] sm:$0xff]  ;;  %vm425_vm6 = vcmask 261120   ;;  %s1638_s17 = smov 768  }
  0x29   :  { %v136_v11 = vld [vmem:[%s2969_s1 + $0x2d8] sm:$0xff]  ;;  %240 = vmatpush.msrb.mxu0 %v121_v4  ;;  %263 = vmatpush.msrb.mxu1 %v137_v7  ;;  %v119_v14 = vld [vmem:[%s2969_s1 + $0x250] sm:$0xff]  ;;  %v118_v16 = vld [vmem:[%s2969_s1 + $0x248] sm:$0xff]  ;;  %s1639_s18 = smov 48  }
  0x2a   :  { %v36_v12 = vld [vmem:[%s2968_s0 + $0x18] sm:$0xff]  ;;  %v135_v15 = vld [vmem:[%s2969_s1 + $0x2d0] sm:$0xff]  ;;  %207 = vmatmul.f32.vlgmr.msra.gmra.mxu2 %v35_v8  ;;  %161 = vmatmul.f32.vlgmr.msra.gmra.mxu0 %v33_v9  ;;  %v134_v17 = vld [vmem:[%s2969_s1 + $0x2c8] sm:$0xff] }
  0x2b   :  { %241 = vmatpush.msrb.mxu0 %v120_v10  ;;  %264 = vmatpush.msrb.mxu1 %v136_v11  ;;  %v117_v18 = vld [vmem:[%s2969_s1 + $0x240] sm:$0xff]  ;;  %v39_v21 = vld [vmem:[%s2968_s0 + $0x30] sm:$0xff]  ;;  %v116_v22 = vld [vmem:[%s2969_s1 + $0x238] sm:$0xff] }
  0x2c   :  { %230 = vmatmul.f32.vlgmr.msra.gmra.mxu3 %v36_v12  ;;  %184 = vmatmul.f32.vlgmr.msra.gmra.mxu1 %v34_v13  ;;  %v133_v19 = vld [vmem:[%s2969_s1 + $0x2c0] sm:$0xff]  ;;  %v132_v23 = vld [vmem:[%s2969_s1 + $0x2b8] sm:$0xff]  ;;  %v42_v24 = vld [vmem:[%s2968_s0 + $0x48] sm:$0xff] }
  0x2d   :  { %242 = vmatpush.msrb.mxu0 %v119_v14  ;;  %265 = vmatpush.msrb.mxu1 %v135_v15  ;;  %v41_v20 = vld [vmem:[%s2968_s0 + $0x40] sm:$0xff]  ;;  %v40_v25 = vld [vmem:[%s2968_s0 + $0x38] sm:$0xff]  ;;  %v115_v26 = vld [vmem:[%s2969_s1 + $0x230] sm:$0xff] }
  0x2e   :  { %v131_v27 = vld [vmem:[%s2969_s1 + $0x2b0] sm:$0xff]  ;;  %v114_v28 = vld [vmem:[%s2969_s1 + $0x228] sm:$0xff]  ;;  %v113_v30 = vld [vmem:[%s2969_s1 + $0x220] sm:$0xff] }
  0x2f   :  { %243 = vmatpush.msrb.mxu0 %v118_v16  ;;  %266 = vmatpush.msrb.mxu1 %v134_v17  ;;  %v130_v29 = vld [vmem:[%s2969_s1 + $0x2a8] sm:$0xff]  ;;  %v129_v31 = vld [vmem:[%s2969_s1 + $0x2a0] sm:$0xff]  ;;  %v112_v32 = vld [vmem:[%s2969_s1 + $0x218] sm:$0xff] }
  0x30   :  { %v128_v33 = vld [vmem:[%s2969_s1 + $0x298] sm:$0xff]  ;;  %v111_v34 = vld [vmem:[%s2969_s1 + $0x210] sm:$0xff]  ;;  %v110_v36 = vld [vmem:[%s2969_s1 + $0x208] sm:$0xff] }
  0x31   :  { %244 = vmatpush.msrb.mxu0 %v117_v18  ;;  %267 = vmatpush.msrb.mxu1 %v133_v19  ;;  %v127_v35 = vld [vmem:[%s2969_s1 + $0x290] sm:$0xff]  ;;  %v126_v37 = vld [vmem:[%s2969_s1 + $0x288] sm:$0xff]  ;;  %v109_v38 = vld [vmem:[%s2969_s1 + $0x200] sm:$0xff] }
  0x32   :  { %210 = vmatmul.f32.gmra.mxu2 %v41_v20  ;;  %164 = vmatmul.f32.gmra.mxu0 %v39_v21  ;;  %v125_v39 = vld [vmem:[%s2969_s1 + $0x280] sm:$0xff]  ;;  %v38_v41 = vld [vmem:[%s2968_s0 + $0x28] sm:$0xff]  ;;  %v43_v42 = vld [vmem:[%s2968_s0 + $0x50] sm:$0xff] }
  0x33   :  { %245 = vmatpush.msrb.mxu0 %v116_v22  ;;  %268 = vmatpush.msrb.mxu1 %v132_v23  ;;  %v37_v40 = vld [vmem:[%s2968_s0 + $0x20] sm:$0xff]  ;;  %v44_v43 = vld [vmem:[%s2968_s0 + $0x58] sm:$0xff]  ;;  %v1516_v23 = vld [vmem:[%s2971_s3 + $0x30] sm:$0xff] }
  0x34   :  { %233 = vmatmul.f32.gmra.mxu3 %v42_v24  ;;  %187 = vmatmul.f32.gmra.mxu1 %v40_v25  ;;  %v1561_v46 = vld [vmem:[%s2970_s2] ss:$0 sm:$0xff]  ;;  %v1517_v19 = vld [vmem:[%s2971_s3 + $0x38] sm:$0xff] }
  0x35   :  { %246 = vmatpush.msrb.mxu0 %v115_v26  ;;  %269 = vmatpush.msrb.mxu1 %v131_v27 }
  0x36   :  { %444 = vmatpush.msrb.mxu2 %v1517_v19 }
  0x37   :  { %247 = vmatpush.msrb.mxu0 %v114_v28  ;;  %270 = vmatpush.msrb.mxu1 %v130_v29  ;;  %v1515_v28 = vld [vmem:[%s2971_s3 + $0x28] sm:$0xff] }
  0x38   :  { %445 = vmatpush.msrb.mxu2 %v1516_v23 }
  0x39   :  { %248 = vmatpush.msrb.mxu0 %v113_v30  ;;  %271 = vmatpush.msrb.mxu1 %v129_v31 }
  0x3a   :  { %446 = vmatpush.msrb.mxu2 %v1515_v28  ;;  %v371_v28 = vlaneseq }
  0x3b   :  { %249 = vmatpush.msrb.mxu0 %v112_v32  ;;  %272 = vmatpush.msrb.mxu1 %v128_v33  ;;  %v1514_v32 = vld [vmem:[%s2971_s3 + $0x20] sm:$0xff] }
  0x3c   :  { %447 = vmatpush.msrb.mxu2 %v1514_v32  ;;  %v372_v32 = vshrl.u32 %v371_v28, 7  ;;  %v621_v28 = vld [vmem:[%s2973_s5 + $0x38] sm:$0xff] }
  0x3d   :  { %250 = vmatpush.msrb.mxu0 %v111_v34  ;;  %273 = vmatpush.msrb.mxu1 %v127_v35  ;;  %v419_v34 = vld [vmem:[%s2971_s3 + $0x18] sm:$0xff] }
  0x3e   :  { %473 = vmatpush.msrb.mxu3 %v419_v34  ;;  %v378_v34 = vand.u32 7, %v372_v32  ;;  %vm402_vm9 = vcmp.lt.s32.totalorder %v372_v32, 1  ;;  %vm411_vm11 = vcmp.lt.s32.totalorder %v372_v32, 7 }
  0x3f   :  { %251 = vmatpush.msrb.mxu0 %v110_v36  ;;  %274 = vmatpush.msrb.mxu1 %v126_v37  ;;  %v1525_v37 = vld [vmem:[%s2971_s3 + $0x58] sm:$0xff] }
  0x40   :  { %507 = vmatpush.msra.mxu2 %v1525_v37  ;;  %vm398_vm10 = vcmp.eq.s32.totalorder %v378_v34, 0  ;;  %vm407_vm12 = vcmp.eq.s32.totalorder %v378_v34, 7  ;;  %v617_v34 = vld [vmem:[%s2973_s5 + $0x18] sm:$0xff] }
  0x41   :  { %252 = vmatpush.msrb.mxu0 %v109_v38  ;;  %275 = vmatpush.msrb.mxu1 %v125_v39  ;;  %v418_v38 = vld [vmem:[%s2971_s3 + $0x10] sm:$0xff] }
  0x42   :  { %253 = vmatmul.f32.vlgmr.msrb.gmra.mxu0 %v37_v40  ;;  %276 = vmatmul.f32.vlgmr.msrb.gmra.mxu1 %v38_v41  ;;  %v1524_v41 = vld [vmem:[%s2971_s3 + $0x50] sm:$0xff] }
  0x43   :  { %474 = vmatpush.msrb.mxu3 %v418_v38  ;;  %508 = vmatpush.msra.mxu2 %v1524_v41 }
  0x4a   :  { %256 = vmatmul.f32.gmra.mxu0 %v43_v42  ;;  %279 = vmatmul.f32.gmra.mxu1 %v44_v43  ;;  %v417_v42 = vld [vmem:[%s2971_s3 + $0x8] sm:$0xff] }
  0x4b   :  { %475 = vmatpush.msrb.mxu3 %v417_v42 }
  0xa7   :  { %v162_v44 = vpop.f32.mrf.mxu0 }
  0xa8   :  { %v163_v47 = vadd.f32 %v1561_v46, %v162_v44 }
  0xa9   :  { %v185_v45 = vpop.f32.mrf.mxu1 }
  0xaa   :  { %v186_v51 = vadd.f32 %v185_v45, %v163_v47 }
  0xad   :  { %v208_v48 = vpop.f32.mrf.mxu2 }
  0xae   :  { %v209_v53 = vadd.f32 %v208_v48, %v186_v51 }
  0xaf   :  { %v165_v49 = vpop.f32.mrf.mxu0  ;;  %v231_v52 = vpop.f32.mrf.mxu3 }
  0xb0   :  { %v166_v54 = vadd.f32 %v1561_v46, %v165_v49  ;;  %v232_v55 = vadd.f32 %v231_v52, %v209_v53  ;;  %v1523_v49 = vld [vmem:[%s2971_s3 + $0x48] sm:$0xff] }
  0xb1   :  { %v188_v50 = vpop.f32.mrf.mxu1  ;;  %509 = vmatpush.msra.mxu2 %v1523_v49 }
  0xb2   :  { %v189_v56 = vadd.f32 %v188_v50, %v166_v54  ;;  %v416_v50 = vld [vmem:[%s2971_s3] sm:$0xff] }
  0xb3   :  { %476 = vmatpush.msrb.mxu3 %v416_v50 }
  0xb5   :  { %v211_v57 = vpop.f32.mrf.mxu2 }
  0xb6   :  { %v212_v61 = vadd.f32 %v211_v57, %v189_v56  ;;  %v1522_v56 = vld [vmem:[%s2971_s3 + $0x40] sm:$0xff] }
  0xb7   :  { %v234_v63 = vpop.f32.mrf.mxu3  ;;  %510 = vmatpush.msra.mxu2 %v1522_v56 }
  0xb8   :  { %v235_v1 = vadd.f32 %v234_v63, %v212_v61 }
  0xbf   :  { %v254_v58 = vpop.f32.mrf.mxu0  ;;  %v277_v59 = vpop.f32.mrf.mxu1 }
  0xc0   :  { %v255_v60 = vadd.f32 %v254_v58, %v232_v55 }
  0xc2   :  { %v2017_v62 = vadd.f32 %v277_v59, %v255_v60 }
  0xc4   :  { %v2020_v0 = vmul.f32 0.70710677, %v2017_v62  ;;  %v283_v23 = vmul.f32 0.5, %v2017_v62 }
  0xc6   :  { %v287_v2 = vmul.f32 %v2020_v0, %v2020_v0 }
  0xc7   :  { %v257_v3 = vpop.f32.mrf.mxu0  ;;  %v280_v4 = vpop.f32.mrf.mxu1 }
  0xc8   :  { %v2024_v5 = vmin.f32 %v287_v2, 16.0  ;;  %v258_v6 = vadd.f32 %v257_v3, %v235_v1 }
  0xca   :  { %v289_v7 = vmul.f32 2.1237322e-06, %v2024_v5  ;;  %v300_v8 = vmul.f32 3.8918573e-05, %v2024_v5  ;;  %v2028_v9 = vadd.f32 %v280_v4, %v258_v6 }
  0xcc   :  { %v290_v10 = vadd.f32 0.00028619796, %v289_v7  ;;  %v301_v11 = vadd.f32 0.001143296, %v300_v8  ;;  %v2031_v12 = vmul.f32 0.70710677, %v2028_v9 }
  0xcd   :  { %v284_v62 = vmul.f32 0.5, %v2028_v9 }
  0xce   :  { %v291_v13 = vmul.f32 %v290_v10, %v2024_v5  ;;  %v302_v14 = vmul.f32 %v301_v11, %v2024_v5  ;;  %v327_v15 = vmul.f32 %v2031_v12, %v2031_v12 }
  0xd0   :  { %v303_v16 = vadd.f32 0.014752088, %v302_v14  ;;  %v292_v17 = vadd.f32 0.0036580483, %v291_v13  ;;  %v2037_v18 = vmin.f32 %v327_v15, 16.0 }
  0xd2   :  { %v304_v20 = vmul.f32 %v303_v16, %v2024_v5  ;;  %v329_v21 = vmul.f32 2.1237322e-06, %v2037_v18  ;;  %v340_v22 = vmul.f32 3.8918573e-05, %v2037_v18  ;;  %v293_v25 = vmul.f32 %v292_v17, %v2024_v5 }
  0xd4   :  { %v305_v24 = vadd.f32 0.112945676, %v304_v20  ;;  %v330_v26 = vadd.f32 0.00028619796, %v329_v21  ;;  %v341_v27 = vadd.f32 0.001143296, %v340_v22 }
  0xd5   :  { %v294_v35 = vadd.f32 0.05243302, %v293_v25 }
  0xd6   :  { %v306_v29 = vmul.f32 %v305_v24, %v2024_v5  ;;  %v331_v30 = vmul.f32 %v330_v26, %v2037_v18  ;;  %v342_v31 = vmul.f32 %v341_v27, %v2037_v18 }
  0xd7   :  { %v295_v45 = vmul.f32 %v294_v35, %v2024_v5 }
  0xd8   :  { %v307_v33 = vadd.f32 0.4994258, %v306_v29  ;;  %v343_v36 = vadd.f32 0.014752088, %v342_v31  ;;  %v332_v40 = vadd.f32 0.0036580483, %v331_v30 }
  0xd9   :  { %v296_v51 = vadd.f32 0.18741608, %v295_v45 }
  0xda   :  { %v308_v39 = vmul.f32 %v307_v33, %v2024_v5  ;;  %v344_v43 = vmul.f32 %v343_v36, %v2037_v18  ;;  %v333_v47 = vmul.f32 %v332_v40, %v2037_v18  ;;  %v373_v36 = vadd.s32 8, %v372_v32 }
  0xdb   :  { %v297_v57 = vmul.f32 %v296_v51, %v2024_v5 }
  0xdc   :  { %v309_v44 = vadd.f32 1.0, %v308_v39  ;;  %v345_v46 = vadd.f32 0.112945676, %v344_v43  ;;  %v334_v53 = vadd.f32 0.05243302, %v333_v47  ;;  %v385_v42 = vand.u32 7, %v373_v36 }
  0xdd   :  { %v298_v1 = vadd.f32 1.1283791, %v297_v57 }
  0xde   :  { %1563 = vrcp.f32 %v309_v44  ;;  %v346_v48 = vmul.f32 %v345_v46, %v2037_v18  ;;  %v335_v60 = vmul.f32 %v334_v53, %v2037_v18  ;;  %v321_v63 = vand.u32 2147483648, %v309_v44 }
  0xdf   :  { %v319_v3 = vand.u32 2147483647, %v309_v44  ;;  %vm315_vm1 = vweird.f32 %v309_v44  ;;  %v299_v5 = vmul.f32 %v298_v1, %v2020_v0  ;;  %vm399_vm13 = vcmp.eq.s32.totalorder %v385_v42, 0 }
  0xe0   :  { %v347_v52 = vadd.f32 0.4994258, %v346_v48  ;;  %v336_v4 = vadd.f32 0.18741608, %v335_v60  ;;  %v322_v7 = vor.u32 1.1754944e-38, %v321_v63  ;;  %vm408_vm14 = vcmp.eq.s32.totalorder %v385_v42, 7 }
  0xe1   :  { %vm320_vm3 = vcmp.eq.f32.partialorder %v319_v3, 8.507059e+37 }
  0xe2   :  { %v348_v54 = vmul.f32 %v347_v52, %v2037_v18  ;;  %v337_v13 = vmul.f32 %v336_v4, %v2037_v18  ;;  %v1562_v52 = vld [vmem:[%s2972_s4] ss:$0 sm:$0xff]  ;;  %s1500_s4 = sshll.u32 %s2977_s9, 4  ;;  %s1501_s4 = int_to_ptr.hbm [resolvable:$true] %s1500_s4 }
  0xe4   :  { %v1564_v55 = vpop.eup %1563  ;;  %v349_v59 = vadd.f32 1.0, %v348_v54  ;;  %v338_v20 = vadd.f32 1.1283791, %v337_v13 }
  0xe5   :  { %v311_v58 = vmul.f32 %v1564_v55, %v309_v44  ;;  %vm316_vm0 = vweird.f32 %v1564_v55 }
  0xe6   :  { %1565 = vrcp.f32 %v349_v59  ;;  %vm317_vm2 = vmor %vm315_vm1, %vm316_vm0  ;;  %v361_v19 = vand.u32 2147483648, %v349_v59  ;;  %v359_v22 = vand.u32 2147483647, %v349_v59  ;;  %vm355_vm5 = vweird.f32 %v349_v59 }
  0xe7   :  { %v312_v61 = vsub.f32 1.0, %v311_v58  ;;  %v339_v18 = vmul.f32 %v338_v20, %v2031_v12 }
  0xe8   :  { %v362_v26 = vor.u32 1.1754944e-38, %v361_v19  ;;  %vm360_vm8 = vcmp.eq.f32.partialorder %v359_v22, 8.507059e+37  ;;  %v626_v22 = vld [vmem:[%s2973_s5 + $0x60] sm:$0xff] }
  0xe9   :  { %v313_v2 = vmul.f32 %v1564_v55, %v312_v61 }
  0xeb   :  { %v314_v6 = vadd.f32 %v1564_v55, %v313_v2 }
  0xec   :  { %v1566_v8 = vpop.eup %1565 }
  0xed   :  { %v318_v10 = vsel %vm317_vm2, %v1564_v55, %v314_v6  ;;  %v351_v14 = vmul.f32 %v1566_v8, %v349_v59  ;;  %vm356_vm4 = vweird.f32 %v1566_v8 }
  0xee   :  { %v323_v11 = vsel %vm320_vm3, %v322_v7, %v318_v10  ;;  %vm357_vm7 = vmor %vm355_vm5, %vm356_vm4 }
  0xef   :  { %v324_v15 = vmul.f32 %v323_v11, %v299_v5  ;;  %v352_v16 = vsub.f32 1.0, %v351_v14 }
  0xf1   :  { %v1512_v17 = vclamps-f32 %v324_v15, 1.0  ;;  %v353_v21 = vmul.f32 %v1566_v8, %v352_v16  ;;  %v632_v15 = vld [vmem:[%s2973_s5 + $0x90] sm:$0xff]  ;;  %v633_v16 = vld [vmem:[%s2973_s5 + $0x98] sm:$0xff] }
  0xf2   :  { %670 = vmatpush.msra.mxu3 %v632_v15  ;;  %693 = vmatpush.msra.mxu0 %v633_v16 }
  0xf3   :  { %v367_v24 = vadd.f32 1.0, %v1512_v17  ;;  %v354_v25 = vadd.f32 %v1566_v8, %v353_v21  ;;  %v635_v17 = vld [vmem:[%s2973_s5 + $0xa8] sm:$0xff]  ;;  %1554 = vmatpush.msra.mxu1 %v633_v16 }
  0xf4   :  { %671 = vmatpush.msra.mxu3 %v626_v22 }
  0xf5   :  { %v369_v0 = vmul.f32 %v367_v24, %v283_v23  ;;  %v358_v27 = vsel %vm357_vm7, %v1566_v8, %v354_v25  ;;  %v627_v23 = vld [vmem:[%s2973_s5 + $0x68] sm:$0xff]  ;;  %v629_v25 = vld [vmem:[%s2973_s5 + $0x78] sm:$0xff] }
  0xf6   :  { %v363_v29 = vsel %vm360_vm8, %v362_v26, %v358_v27  ;;  %694 = vmatpush.msra.mxu0 %v627_v23  ;;  %v620_v27 = vld [vmem:[%s2973_s5 + $0x30] sm:$0xff]  ;;  %1555 = vmatpush.msra.mxu1 %v627_v23 }
  0xf7   :  { %1518 = vmatmul.msk.f32.vlgmr.msrb.gmra.mxu2 %vm425_vm6, %v369_v0  ;;  %v364_v30 = vmul.f32 %v363_v29, %v339_v18  ;;  %v400_v12 = vrot.slane %v369_v0, 7  ;;  %v409_v39 = vrot.slane %v369_v0, 1  ;;  %672 = vmatpush.msra.mxu3 %v620_v27 }
  0xf8   :  { %739 = vmatpush.msrb.mxu2 %v635_v17  ;;  %695 = vmatpush.msra.mxu0 %v621_v28 }
  0xf9   :  { %v1513_v31 = vclamps-f32 %v364_v30, 1.0  ;;  %v623_v30 = vld [vmem:[%s2973_s5 + $0x48] sm:$0xff]  ;;  %1556 = vmatpush.msra.mxu1 %v621_v28 }
  0xfa   :  { %740 = vmatpush.msrb.mxu2 %v629_v25 }
  0xfb   :  { %v368_v33 = vadd.f32 1.0, %v1513_v31 }
  0xfc   :  { %741 = vmatpush.msrb.mxu2 %v623_v30 }
  0xfd   :  { %v370_v35 = vmul.f32 %v368_v33, %v284_v62  ;;  %v614_v62 = vld [vmem:[%s2973_s5] sm:$0xff]  ;;  %v615_v33 = vld [vmem:[%s2973_s5 + $0x8] sm:$0xff] }
  0xfe   :  { %673 = vmatpush.msra.mxu3 %v614_v62  ;;  %696 = vmatpush.msra.mxu0 %v615_v33 }
  0xff   :  { %v401_v37 = vrot.slane %v370_v35, 7  ;;  %v410_v38 = vrot.slane %v370_v35, 1  ;;  %1519 = vmatmul.msk.f32.gmra.mxu2 %vm425_vm6, %v370_v35  ;;  %1557 = vmatpush.msra.mxu1 %v615_v33 }
 0x100   :  { %742 = vmatpush.msrb.mxu2 %v617_v34 }
 0x101   :  { %v404_v40 = vsel %vm402_vm9, %v401_v37, %v400_v12  ;;  %v412_v9 = vsel %vm411_vm11, %v409_v39, %v410_v38  ;;  %v403_v44 = vsel %vm402_vm9, %v400_v12, %v401_v37  ;;  %v413_v46 = vsel %vm411_vm11, %v410_v38, %v409_v39  ;;  %v637_v38 = vld [vmem:[%s2973_s5 + $0xb8] sm:$0xff] }
 0x102   :  { %v405_v41 = vsel %vm398_vm10, 0.0, %v404_v40  ;;  %v414_v43 = vsel %vm407_vm12, 0.0, %v412_v9  ;;  %v406_v45 = vsel %vm399_vm13, 0.0, %v403_v44  ;;  %v415_v47 = vsel %vm408_vm14, 0.0, %v413_v46  ;;  %785 = vmatpush.msrb.mxu0 %v637_v38  ;;  %v625_v44 = vld [vmem:[%s2973_s5 + $0x58] sm:$0xff]  ;;  %v636_v46 = vld [vmem:[%s2973_s5 + $0xb0] sm:$0xff] }
 0x103   :  { %1520 = vmatmul.msk.f32.vlgmr.msrb.gmra.mxu3 %vm425_vm6, %v405_v41  ;;  %v631_v41 = vld [vmem:[%s2973_s5 + $0x88] sm:$0xff] }
 0x104   :  { %786 = vmatpush.msrb.mxu0 %v631_v41  ;;  %762 = vmatpush.msrb.mxu3 %v636_v46 }
 0x106   :  { %787 = vmatpush.msrb.mxu0 %v625_v44 }
 0x107   :  { %1526 = vmatmul.msk.f32.vlgmr.msra.gmra.mxu2 %vm425_vm6, %v414_v43 }
 0x10b   :  { %1521 = vmatmul.msk.f32.gmra.mxu3 %vm425_vm6, %v406_v45 }
 0x10f   :  { %1527 = vmatmul.msk.f32.gmra.mxu2 %vm425_vm6, %v415_v47  ;;  %v630_v47 = vld [vmem:[%s2973_s5 + $0x80] sm:$0xff] }
 0x110   :  { %763 = vmatpush.msrb.mxu3 %v630_v47 }
 0x17a   :  { %v449_v48 = vpop.f32.mrf.mxu2 }
 0x182   :  { %v452_v49 = vpop.f32.mrf.mxu2 }
 0x186   :  { %v478_v50 = vpop.f32.mrf.mxu3 }
 0x187   :  { %v479_v51 = vadd.f32 %v478_v50, %v449_v48  ;;  %v619_v48 = vld [vmem:[%s2973_s5 + $0x28] sm:$0xff] }
 0x188   :  { %788 = vmatpush.msrb.mxu0 %v619_v48 }
 0x18a   :  { %v512_v53 = vpop.f32.mrf.mxu2 }
 0x18b   :  { %v518_v54 = vadd.f32 %v512_v53, %v479_v51 }
 0x18d   :  { %v2106_v55 = vadd.f32 %v1562_v52, %v518_v54  ;;  %v634_v54 = vld [vmem:[%s2973_s5 + $0xa0] sm:$0xff] }
 0x18e   :  { %v481_v56 = vpop.f32.mrf.mxu3  ;;  %716 = vmatpush.msrb.mxu1 %v634_v54 }
 0x18f   :  { %v2109_v57 = vmul.f32 0.70710677, %v2106_v55  ;;  %v482_v59 = vadd.f32 %v481_v56, %v452_v49  ;;  %v628_v56 = vld [vmem:[%s2973_s5 + $0x70] sm:$0xff]  ;;  %v526_v30 = vmul.f32 0.5, %v2106_v55 }
 0x190   :  { %717 = vmatpush.msrb.mxu1 %v628_v56 }
 0x191   :  { %v530_v58 = vmul.f32 %v2109_v57, %v2109_v57 }
 0x192   :  { %v515_v60 = vpop.f32.mrf.mxu2 }
 0x193   :  { %v2113_v61 = vmin.f32 %v530_v58, 16.0  ;;  %v519_v63 = vadd.f32 %v515_v60, %v482_v59  ;;  %v618_v58 = vld [vmem:[%s2973_s5 + $0x20] sm:$0xff] }
 0x195   :  { %v532_v1 = vmul.f32 2.1237322e-06, %v2113_v61  ;;  %v543_v2 = vmul.f32 3.8918573e-05, %v2113_v61  ;;  %v2117_v3 = vadd.f32 %v1562_v52, %v519_v63  ;;  %v624_v52 = vld [vmem:[%s2973_s5 + $0x50] sm:$0xff]  ;;  %v622_v63 = vld [vmem:[%s2973_s5 + $0x40] sm:$0xff] }
 0x196   :  { %764 = vmatpush.msrb.mxu3 %v624_v52  ;;  %718 = vmatpush.msrb.mxu1 %v622_v63 }
 0x197   :  { %v533_v4 = vadd.f32 0.00028619796, %v532_v1  ;;  %v544_v6 = vadd.f32 0.001143296, %v543_v2  ;;  %v2120_v7 = vmul.f32 0.70710677, %v2117_v3 }
 0x198   :  { %765 = vmatpush.msrb.mxu3 %v618_v58  ;;  %v527_v55 = vmul.f32 0.5, %v2117_v3  ;;  %v2235_v3 = vld [vmem:[%s2974_s6] sm:$0x3f] }
 0x199   :  { %v534_v8 = vmul.f32 %v533_v4, %v2113_v61  ;;  %v545_v5 = vmul.f32 %v544_v6, %v2113_v61  ;;  %v570_v10 = vmul.f32 %v2120_v7, %v2120_v7  ;;  %v640_v41 = vperm.slane %v2235_v3, 0 }
 0x19b   :  { %v546_v11 = vadd.f32 0.014752088, %v545_v5  ;;  %v535_v13 = vadd.f32 0.0036580483, %v534_v8  ;;  %v2126_v14 = vmin.f32 %v570_v10, 16.0  ;;  %v616_v8 = vld [vmem:[%s2973_s5 + $0x10] sm:$0xff] }
 0x19c   :  { %719 = vmatpush.msrb.mxu1 %v616_v8 }
 0x19d   :  { %v547_v19 = vmul.f32 %v546_v11, %v2113_v61  ;;  %v572_v20 = vmul.f32 2.1237322e-06, %v2126_v14  ;;  %v583_v21 = vmul.f32 3.8918573e-05, %v2126_v14  ;;  %v536_v0 = vmul.f32 %v535_v13, %v2113_v61 }
 0x19f   :  { %v548_v24 = vadd.f32 0.112945676, %v547_v19  ;;  %v573_v26 = vadd.f32 0.00028619796, %v572_v20  ;;  %v584_v18 = vadd.f32 0.001143296, %v583_v21 }
 0x1a0   :  { %v537_v36 = vadd.f32 0.05243302, %v536_v0 }
 0x1a1   :  { %v549_v29 = vmul.f32 %v548_v24, %v2113_v61  ;;  %v574_v31 = vmul.f32 %v573_v26, %v2126_v14  ;;  %v585_v32 = vmul.f32 %v584_v18, %v2126_v14 }
 0x1a2   :  { %v538_v42 = vmul.f32 %v537_v36, %v2113_v61 }
 0x1a3   :  { %v550_v35 = vadd.f32 0.4994258, %v549_v29  ;;  %v586_v37 = vadd.f32 0.014752088, %v585_v32  ;;  %v575_v39 = vadd.f32 0.0036580483, %v574_v31 }
 0x1a4   :  { %v539_v50 = vadd.f32 0.18741608, %v538_v42 }
 0x1a5   :  { %v551_v12 = vmul.f32 %v550_v35, %v2113_v61  ;;  %v587_v40 = vmul.f32 %v586_v37, %v2126_v14  ;;  %v576_v45 = vmul.f32 %v575_v39, %v2126_v14 }
 0x1a6   :  { %v540_v1 = vmul.f32 %v539_v50, %v2113_v61 }
 0x1a7   :  { %v552_v9 = vadd.f32 1.0, %v551_v12  ;;  %v588_v43 = vadd.f32 0.112945676, %v587_v40  ;;  %v577_v53 = vadd.f32 0.05243302, %v576_v45 }
 0x1a8   :  { %v541_v11 = vadd.f32 1.1283791, %v540_v1 }
 0x1a9   :  { %1567 = vrcp.f32 %v552_v9  ;;  %v589_v49 = vmul.f32 %v588_v43, %v2126_v14  ;;  %v578_v6 = vmul.f32 %v577_v53, %v2126_v14  ;;  %v564_v10 = vand.u32 2147483648, %v552_v9 }
 0x1aa   :  { %v562_v15 = vand.u32 2147483647, %v552_v9  ;;  %vm558_vm0 = vweird.f32 %v552_v9  ;;  %v542_v20 = vmul.f32 %v541_v11, %v2109_v57  ;;  %v645_v11 = vperm.slane %v2235_v3, 5 }
 0x1ab   :  { %v590_v51 = vadd.f32 0.4994258, %v589_v49  ;;  %v579_v61 = vadd.f32 0.18741608, %v578_v6  ;;  %v565_v17 = vor.u32 1.1754944e-38, %v564_v10 }
 0x1ac   :  { %vm563_vm2 = vcmp.eq.f32.partialorder %v562_v15, 8.507059e+37 }
 0x1ad   :  { %v591_v59 = vmul.f32 %v590_v51, %v2126_v14  ;;  %v580_v23 = vmul.f32 %v579_v61, %v2126_v14 }
 0x1af   :  { %v1568_v60 = vpop.eup %1567  ;;  %v592_v4 = vadd.f32 1.0, %v591_v59  ;;  %v581_v27 = vadd.f32 1.1283791, %v580_v23 }
 0x1b0   :  { %v554_v2 = vmul.f32 %v1568_v60, %v552_v9  ;;  %vm559_vm15 = vweird.f32 %v1568_v60  ;;  %v643_v9 = vperm.slane %v2235_v3, 3 }
 0x1b1   :  { %1569 = vrcp.f32 %v592_v4  ;;  %vm560_vm1 = vmor %vm558_vm0, %vm559_vm15  ;;  %v604_v18 = vand.u32 2147483648, %v592_v4  ;;  %v602_v29 = vand.u32 2147483647, %v592_v4  ;;  %vm598_vm4 = vweird.f32 %v592_v4 }
 0x1b2   :  { %v555_v5 = vsub.f32 1.0, %v554_v2  ;;  %v582_v33 = vmul.f32 %v581_v27, %v2120_v7  ;;  %v641_v7 = vperm.slane %v2235_v3, 1 }
 0x1b3   :  { %v605_v62 = vor.u32 1.1754944e-38, %v604_v18  ;;  %vm603_vm7 = vcmp.eq.f32.partialorder %v602_v29, 8.507059e+37 }
 0x1b4   :  { %v556_v13 = vmul.f32 %v1568_v60, %v555_v5 }
 0x1b6   :  { %v557_v16 = vadd.f32 %v1568_v60, %v556_v13 }
 0x1b7   :  { %v1570_v19 = vpop.eup %1569 }
 0x1b8   :  { %v561_v21 = vsel %vm560_vm1, %v1568_v60, %v557_v16  ;;  %v594_v24 = vmul.f32 %v1570_v19, %v592_v4  ;;  %vm599_vm3 = vweird.f32 %v1570_v19 }
 0x1b9   :  { %v566_v22 = vsel %vm563_vm2, %v565_v17, %v561_v21  ;;  %vm600_vm5 = vmor %vm598_vm4, %vm599_vm3 }
 0x1ba   :  { %v567_v25 = vmul.f32 %v566_v22, %v542_v20  ;;  %v595_v0 = vsub.f32 1.0, %v594_v24 }
 0x1bc   :  { %v1528_v26 = vclamps-f32 %v567_v25, 1.0  ;;  %v596_v28 = vmul.f32 %v1570_v19, %v595_v0 }
 0x1be   :  { %v610_v31 = vadd.f32 1.0, %v1528_v26  ;;  %v597_v32 = vadd.f32 %v1570_v19, %v596_v28 }
 0x1c0   :  { %v612_v57 = vmul.f32 %v610_v31, %v526_v30  ;;  %v601_v14 = vsel %vm600_vm5, %v1570_v19, %v597_v32 }
 0x1c1   :  { %v606_v34 = vsel %vm603_vm7, %v605_v62, %v601_v14 }
 0x1c2   :  { %1530 = vmatmul.msk.f32.vlgmr.msra.gmra.mxu3 %vm425_vm6, %v612_v57  ;;  %1532 = vmatmul.msk.f32.vlgmr.msra.gmra.mxu0 %vm425_vm6, %v612_v57  ;;  %v607_v35 = vmul.f32 %v606_v34, %v582_v33 }
 0x1c3   :  { %1536 = vmatmul.msk.f32.vlgmr.msrb.gmra.mxu2 %vm425_vm6, %v612_v57 }
 0x1c4   :  { %v1529_v36 = vclamps-f32 %v607_v35, 1.0 }
 0x1c6   :  { %v611_v37 = vadd.f32 1.0, %v1529_v36 }
 0x1c8   :  { %v613_v38 = vmul.f32 %v611_v37, %v527_v55 }
 0x1ca   :  { %1540 = vmatmul.msk.f32.vlgmr.msrb.gmra.mxu0 %vm425_vm6, %v612_v57  ;;  %1531 = vmatmul.msk.f32.gmra.mxu3 %vm425_vm6, %v613_v38 }
 0x1cb   :  { %1533 = vmatmul.msk.f32.vlgmr.msra.gmra.mxu1 %vm425_vm6, %v613_v38  ;;  %1537 = vmatmul.msk.f32.gmra.mxu2 %vm425_vm6, %v613_v38 }
 0x1d2   :  { %1541 = vmatmul.msk.f32.gmra.mxu0 %vm425_vm6, %v613_v38  ;;  %1538 = vmatmul.msk.f32.vlgmr.msrb.gmra.mxu3 %vm425_vm6, %v612_v57 }
 0x1d3   :  { %1534 = vmatmul.msk.f32.vlgmr.msrb.gmra.mxu1 %vm425_vm6, %v612_v57 }
 0x1da   :  { %1539 = vmatmul.msk.f32.gmra.mxu3 %vm425_vm6, %v613_v38 }
 0x1db   :  { %1535 = vmatmul.msk.f32.gmra.mxu1 %vm425_vm6, %v613_v38 }
 0x23f   :  { %v698_v12 = vpop.f32.mrf.mxu0 }
 0x240   :  { %v2238_v39 = vadd.f32 %v698_v12, %v641_v7 }
 0x242   :  { %v2241_v40 = vmul.f32 0.70710677, %v2238_v39 }
 0x244   :  { %v860_v42 = vmul.f32 %v2241_v40, %v2241_v40 }
 0x245   :  { %v675_v43 = vpop.f32.mrf.mxu3 }
 0x246   :  { %v2247_v44 = vmin.f32 %v860_v42, 16.0  ;;  %v2251_v45 = vadd.f32 %v675_v43, %v640_v41  ;;  %v744_v46 = vpop.f32.mrf.mxu2 }
 0x247   :  { %v2255_v47 = vadd.f32 %v744_v46, %v643_v9  ;;  %v790_v16 = vpop.f32.mrf.mxu0 }
 0x248   :  { %v873_v48 = vmul.f32 3.8918573e-05, %v2247_v44  ;;  %v701_v49 = vpop.f32.mrf.mxu1  ;;  %v2259_v50 = vmul.f32 0.70710677, %v2251_v45  ;;  %v862_v1 = vmul.f32 2.1237322e-06, %v2247_v44  ;;  %v2293_v24 = vadd.f32 %v790_v16, %v645_v11 }
 0x249   :  { %v2262_v51 = vmul.f32 0.70710677, %v2255_v47  ;;  %v2264_v52 = vadd.f32 %v701_v49, %v641_v7 }
 0x24a   :  { %v874_v53 = vadd.f32 0.001143296, %v873_v48  ;;  %v820_v54 = vmul.f32 %v2259_v50, %v2259_v50  ;;  %v863_v13 = vadd.f32 0.00028619796, %v862_v1  ;;  %v2302_v33 = vmul.f32 0.70710677, %v2293_v24 }
 0x24b   :  { %v940_v56 = vmul.f32 %v2262_v51, %v2262_v51  ;;  %v2272_v59 = vmul.f32 0.70710677, %v2264_v52 }
 0x24c   :  { %v875_v58 = vmul.f32 %v874_v53, %v2247_v44  ;;  %v2274_v60 = vmin.f32 %v820_v54, 16.0  ;;  %v864_v25 = vmul.f32 %v863_v13, %v2247_v44  ;;  %v1020_v7 = vmul.f32 %v2302_v33, %v2302_v33 }
 0x24d   :  { %v2276_v63 = vmin.f32 %v940_v56, 16.0  ;;  %v1100_v5 = vmul.f32 %v2272_v59, %v2272_v59  ;;  %v678_v56 = vpop.f32.mrf.mxu3 }
 0x24e   :  { %v876_v2 = vadd.f32 0.014752088, %v875_v58  ;;  %v833_v4 = vmul.f32 3.8918573e-05, %v2274_v60  ;;  %v822_v20 = vmul.f32 2.1237322e-06, %v2274_v60 }
 0x24f   :  { %v953_v8 = vmul.f32 3.8918573e-05, %v2276_v63  ;;  %v2289_v22 = vmin.f32 %v1100_v5, 16.0  ;;  %v942_v26 = vmul.f32 2.1237322e-06, %v2276_v63  ;;  %v2316_v54 = vmin.f32 %v1020_v7, 16.0 }
 0x250   :  { %v877_v6 = vmul.f32 %v876_v2, %v2247_v44  ;;  %v834_v10 = vadd.f32 0.001143296, %v833_v4  ;;  %v823_v28 = vadd.f32 0.00028619796, %v822_v20  ;;  %v865_v32 = vadd.f32 0.0036580483, %v864_v25 }
 0x251   :  { %v954_v61 = vadd.f32 0.001143296, %v953_v8  ;;  %v1113_v29 = vmul.f32 3.8918573e-05, %v2289_v22  ;;  %v943_v62 = vadd.f32 0.00028619796, %v942_v26  ;;  %v2322_v8 = vadd.f32 %v678_v56, %v640_v41 }
 0x252   :  { %v878_v15 = vadd.f32 0.112945676, %v877_v6  ;;  %v835_v17 = vmul.f32 %v834_v10, %v2274_v60  ;;  %v824_v14 = vmul.f32 %v823_v28, %v2274_v60  ;;  %v866_v55 = vmul.f32 %v865_v32, %v2247_v44 }
 0x253   :  { %v955_v21 = vmul.f32 %v954_v61, %v2276_v63  ;;  %v1114_v34 = vadd.f32 0.001143296, %v1113_v29  ;;  %v944_v38 = vmul.f32 %v943_v62, %v2276_v63  ;;  %v1102_v12 = vmul.f32 2.1237322e-06, %v2289_v22 }
 0x254   :  { %v879_v19 = vmul.f32 %v878_v15, %v2247_v44  ;;  %v836_v23 = vadd.f32 0.014752088, %v835_v17  ;;  %v825_v42 = vadd.f32 0.0036580483, %v824_v14  ;;  %v867_v49 = vadd.f32 0.05243302, %v866_v55 }
 0x255   :  { %v956_v18 = vadd.f32 0.014752088, %v955_v21  ;;  %v1115_v43 = vmul.f32 %v1114_v34, %v2289_v22  ;;  %v945_v53 = vadd.f32 0.0036580483, %v944_v38  ;;  %v1103_v58 = vadd.f32 0.00028619796, %v1102_v12 }
 0x256   :  { %v880_v0 = vadd.f32 0.4994258, %v879_v19  ;;  %v837_v27 = vmul.f32 %v836_v23, %v2274_v60  ;;  %v826_v1 = vmul.f32 %v825_v42, %v2274_v60  ;;  %v868_v5 = vmul.f32 %v867_v49, %v2247_v44  ;;  %v747_v42 = vpop.f32.mrf.mxu2 }
 0x257   :  { %v957_v31 = vmul.f32 %v956_v18, %v2276_v63  ;;  %v1116_v2 = vadd.f32 0.014752088, %v1115_v43  ;;  %v946_v10 = vmul.f32 %v945_v53, %v2276_v63  ;;  %v1033_v13 = vmul.f32 3.8918573e-05, %v2316_v54 }
 0x258   :  { %v838_v30 = vadd.f32 0.112945676, %v837_v27  ;;  %v881_v57 = vmul.f32 %v880_v0, %v2247_v44  ;;  %v1104_v15 = vmul.f32 %v1103_v58, %v2289_v22  ;;  %v827_v16 = vadd.f32 0.05243302, %v826_v1 }
 0x259   :  { %v958_v36 = vadd.f32 0.112945676, %v957_v31  ;;  %v1117_v17 = vmul.f32 %v1116_v2, %v2289_v22  ;;  %v1034_v21 = vadd.f32 0.001143296, %v1033_v13  ;;  %v2335_v41 = vmul.f32 0.70710677, %v2322_v8 }
 0x25a   :  { %v839_v35 = vmul.f32 %v838_v30, %v2274_v60  ;;  %v2307_v37 = vadd.f32 1.0, %v881_v57  ;;  %v869_v23 = vadd.f32 0.18741608, %v868_v5  ;;  %v947_v25 = vadd.f32 0.05243302, %v946_v10 }
 0x25b   :  { %v959_v48 = vmul.f32 %v958_v36, %v2276_v63  ;;  %v1105_v26 = vadd.f32 0.0036580483, %v1104_v15  ;;  %v1035_v18 = vmul.f32 %v1034_v21, %v2316_v54  ;;  %v1118_v27 = vadd.f32 0.112945676, %v1117_v17 }
 0x25c   :  { %v840_v46 = vadd.f32 0.4994258, %v839_v35  ;;  %1571 = vrcp.f32 %v2307_v37  ;;  %v1060_v28 = vmul.f32 %v2335_v41, %v2335_v41  ;;  %v828_v29 = vmul.f32 %v827_v16, %v2274_v60 }
 0x25d   :  { %v960_v6 = vadd.f32 0.4994258, %v959_v48  ;;  %v1036_v31 = vadd.f32 0.014752088, %v1035_v18  ;;  %v870_v32 = vmul.f32 %v869_v23, %v2247_v44  ;;  %v948_v57 = vmul.f32 %v947_v25, %v2276_v63 }
 0x25e   :  { %v841_v4 = vmul.f32 %v840_v46, %v2274_v60  ;;  %v1106_v14 = vmul.f32 %v1105_v26, %v2289_v22  ;;  %v1119_v34 = vmul.f32 %v1118_v27, %v2289_v22  ;;  %v1022_v35 = vmul.f32 2.1237322e-06, %v2316_v54 }
 0x25f   :  { %v961_v20 = vmul.f32 %v960_v6, %v2276_v63  ;;  %v2351_v36 = vmin.f32 %v1060_v28, 16.0  ;;  %v829_v55 = vadd.f32 0.18741608, %v828_v29  ;;  %v1037_v38 = vmul.f32 %v1036_v31, %v2316_v54 }
 0x260   :  { %v2331_v19 = vadd.f32 1.0, %v841_v4  ;;  %v2356_v7 = vmul.f32 0.5, %v2238_v39  ;;  %v871_v44 = vadd.f32 1.1283791, %v870_v32  ;;  %v949_v12 = vadd.f32 0.18741608, %v948_v57 }
 0x261   :  { %v2344_v30 = vadd.f32 1.0, %v961_v20  ;;  %v2362_v48 = vmul.f32 0.5, %v2251_v45  ;;  %v1107_v49 = vadd.f32 0.05243302, %v1106_v14  ;;  %v1038_v53 = vadd.f32 0.112945676, %v1037_v38 }
 0x262   :  { %v2328_v61 = vpop.eup %1571  ;;  %1573 = vrcp.f32 %v2331_v19  ;;  %v1120_v56 = vadd.f32 0.4994258, %v1119_v34  ;;  %v1023_v58 = vadd.f32 0.00028619796, %v1022_v35  ;;  %v1073_v1 = vmul.f32 3.8918573e-05, %v2351_v36 }
 0x263   :  { %v884_v0 = vmul.f32 %v2328_v61, %v2307_v37  ;;  %1575 = vrcp.f32 %v2344_v30  ;;  %v830_v2 = vmul.f32 %v829_v55, %v2274_v60  ;;  %v2367_v39 = vmul.f32 0.5, %v2255_v47 }
 0x264   :  { %v1039_v4 = vmul.f32 %v1038_v53, %v2316_v54  ;;  %v2372_v6 = vadd.f32 %v747_v42, %v643_v9  ;;  %v872_v45 = vmul.f32 %v871_v44, %v2241_v40  ;;  %v950_v10 = vmul.f32 %v949_v12, %v2276_v63 }
 0x265   :  { %v885_v62 = vsub.f32 1.0, %v884_v0  ;;  %v2379_v13 = vmul.f32 0.5, %v2293_v24  ;;  %vm889_vm6 = vweird.f32 %v2328_v61  ;;  %v894_v15 = vand.u32 2147483648, %v2307_v37 }
 0x266   :  { %v1040_v9 = vadd.f32 0.4994258, %v1039_v4  ;;  %v1108_v16 = vmul.f32 %v1107_v49, %v2289_v22  ;;  %v1121_v40 = vmul.f32 %v1120_v56, %v2289_v22  ;;  %v1024_v17 = vmul.f32 %v1023_v58, %v2316_v54  ;;  %v721_v56 = vpop.f32.mrf.mxu1  ;;  %v793_v58 = vpop.f32.mrf.mxu0 }
 0x267   :  { %v886_v46 = vmul.f32 %v2328_v61, %v885_v62  ;;  %v1074_v20 = vadd.f32 0.001143296, %v1073_v1  ;;  %vm888_vm8 = vweird.f32 %v2307_v37  ;;  %v892_v63 = vand.u32 2147483647, %v2307_v37 }
 0x268   :  { %v2358_v43 = vpop.eup %1573  ;;  %v831_v24 = vadd.f32 1.1283791, %v830_v2  ;;  %v2392_v21 = vmul.f32 0.70710677, %v2372_v6  ;;  %vm2394_vm9 = vmor %vm888_vm8, %vm889_vm6  ;;  %v951_v0 = vadd.f32 1.1283791, %v950_v10  ;;  %v1041_v28 = vmul.f32 %v1040_v9, %v2316_v54 }
 0x269   :  { %v844_v5 = vmul.f32 %v2358_v43, %v2331_v19  ;;  %v2381_v60 = vpop.eup %1575  ;;  %v887_v47 = vadd.f32 %v2328_v61, %v886_v46  ;;  %v1075_v18 = vmul.f32 %v1074_v20, %v2351_v36  ;;  %v852_v37 = vand.u32 2147483647, %v2331_v19 }
 0x26a   :  { %v964_v26 = vmul.f32 %v2381_v60, %v2344_v30  ;;  %v1180_v29 = vmul.f32 %v2392_v21, %v2392_v21  ;;  %v895_v31 = vor.u32 1.1754944e-38, %v894_v15  ;;  %v1109_v32 = vadd.f32 0.18741608, %v1108_v16 }
 0x26b   :  { %v845_v25 = vsub.f32 1.0, %v844_v5  ;;  %v891_v27 = vsel %vm2394_vm9, %v2328_v61, %v887_v47  ;;  %v2408_v57 = vadd.f32 1.0, %v1121_v40  ;;  %v1025_v62 = vadd.f32 0.0036580483, %v1024_v17 }
 0x26c   :  { %vm893_vm10 = vcmp.eq.f32.partialorder %v892_v63, 8.507059e+37  ;;  %v2411_v14 = vmul.f32 %v831_v24, %v2259_v50  ;;  %vm848_vm11 = vweird.f32 %v2331_v19  ;;  %v854_v61 = vand.u32 2147483648, %v2331_v19 }
 0x26d   :  { %v896_v34 = vsel %vm893_vm10, %v895_v31, %v891_v27  ;;  %v846_v35 = vmul.f32 %v2358_v43, %v845_v25  ;;  %v965_v55 = vsub.f32 1.0, %v964_v26  ;;  %v1076_v38 = vadd.f32 0.014752088, %v1075_v18 }
 0x26e   :  { %v2417_v44 = vmul.f32 %v951_v0, %v2262_v51  ;;  %v2419_v12 = vadd.f32 1.0, %v1041_v28  ;;  %v1062_v42 = vmul.f32 2.1237322e-06, %v2351_v36  ;;  %v2422_v46 = vmin.f32 %v1180_v29, 16.0 }
 0x26f   :  { %vm2424_vm12 = vcmp.eq.f32.partialorder %v852_v37, 8.507059e+37  ;;  %v1110_v49 = vmul.f32 %v1109_v32, %v2289_v22  ;;  %1577 = vrcp.f32 %v2408_v57  ;;  %v1026_v53 = vmul.f32 %v1025_v62, %v2316_v54  ;;  %v767_v32 = vpop.f32.mrf.mxu3 }
 0x270   :  { %v897_v51 = vmul.f32 %v896_v34, %v872_v45  ;;  %vm849_vm13 = vweird.f32 %v2358_v43  ;;  %v972_v1 = vand.u32 2147483647, %v2344_v30  ;;  %v642_v2 = vperm.slane %v2235_v3, 2 }
 0x271   :  { %v847_v4 = vadd.f32 %v2358_v43, %v846_v35  ;;  %v966_v5 = vmul.f32 %v2381_v60, %v965_v55  ;;  %v1077_v10 = vmul.f32 %v1076_v38, %v2351_v36  ;;  %v1193_v22 = vmul.f32 3.8918573e-05, %v2422_v46  ;;  %vm2452_vm14 = vmor %vm848_vm11, %vm849_vm13 }
 0x272   :  { %1579 = vrcp.f32 %v2419_v12  ;;  %v1063_v47 = vadd.f32 0.00028619796, %v1062_v42  ;;  %v2441_v45 = vadd.f32 %v721_v56, %v642_v2  ;;  %v2445_v15 = vadd.f32 %v793_v58, %v645_v11 }
 0x273   :  { %v855_v9 = vor.u32 1.1754944e-38, %v854_v61  ;;  %v974_v16 = vand.u32 2147483648, %v2344_v30  ;;  %v1111_v40 = vadd.f32 1.1283791, %v1110_v49  ;;  %v1027_v17 = vadd.f32 0.05243302, %v1026_v53 }
 0x274   :  { %v1543_v20 = vclamps-f32 %v897_v51, 1.0  ;;  %vm968_vm15 = vweird.f32 %v2344_v30  ;;  %vm969_vm0 = vweird.f32 %v2381_v60  ;;  %vm2458_vm1 = vcmp.eq.f32.partialorder %v972_v1, 8.507059e+37 }
 0x275   :  { %v2462_v24 = vpop.eup %1577  ;;  %v851_v23 = vsel %vm2452_vm14, %v2358_v43, %v847_v4  ;;  %v1078_v25 = vadd.f32 0.112945676, %v1077_v10  ;;  %v1194_v19 = vadd.f32 0.001143296, %v1193_v22  ;;  %v2468_v0 = vmul.f32 0.70710677, %v2441_v45  ;;  %vm2494_vm2 = vmor %vm968_vm15, %vm969_vm0 }
 0x276   :  { %v967_v26 = vadd.f32 %v2381_v60, %v966_v5  ;;  %v1064_v18 = vmul.f32 %v1063_v47, %v2351_v36  ;;  %v2473_v27 = vmul.f32 0.70710677, %v2445_v15  ;;  %v644_v37 = vperm.slane %v2235_v3, 4 }
 0x277   :  { %v975_v28 = vor.u32 1.1754944e-38, %v974_v16  ;;  %v2477_v29 = vmul.f32 %v1111_v40, %v2272_v59  ;;  %v1028_v43 = vmul.f32 %v1027_v17, %v2316_v54  ;;  %v900_v31 = vmul.f32 %v2468_v0, %v2468_v0 }
 0x278   :  { %v2482_v62 = vpop.eup %1579  ;;  %v856_v61 = vsel %vm2424_vm12, %v855_v9, %v851_v23  ;;  %v1124_v34 = vmul.f32 %v2462_v24, %v2408_v57  ;;  %v1132_v35 = vand.u32 2147483647, %v2408_v57  ;;  %v1182_v55 = vmul.f32 2.1237322e-06, %v2422_v46 }
 0x279   :  { %v1301_v59 = vadd.f32 1.0, %v1543_v20  ;;  %v1079_v42 = vmul.f32 %v1078_v25, %v2351_v36  ;;  %v1195_v50 = vmul.f32 %v1194_v19, %v2422_v46  ;;  %v2500_v49 = vmin.f32 %v900_v31, 16.0 }
 0x27a   :  { %v971_v53 = vsel %vm2494_vm2, %v2381_v60, %v967_v26  ;;  %v1065_v56 = vadd.f32 0.0036580483, %v1064_v18  ;;  %v1260_v58 = vmul.f32 %v2473_v27, %v2473_v27  ;;  %v2509_v30 = vadd.f32 %v767_v32, %v644_v37 }
 0x27b   :  { %v857_v51 = vmul.f32 %v856_v61, %v2411_v14  ;;  %v1029_v1 = vadd.f32 0.18741608, %v1028_v43  ;;  %v1044_v4 = vmul.f32 %v2482_v62, %v2419_v12  ;;  %v902_v5 = vmul.f32 2.1237322e-06, %v2500_v49 }
 0x27c   :  { %v1125_v10 = vsub.f32 1.0, %v1124_v34  ;;  %v1134_v22 = vand.u32 2147483648, %v2408_v57  ;;  %v1183_v60 = vadd.f32 0.00028619796, %v1182_v55  ;;  %v913_v47 = vmul.f32 3.8918573e-05, %v2500_v49 }
 0x27d   :  { %v976_v9 = vsel %vm2458_vm1, %v975_v28, %v971_v53  ;;  %v1080_v16 = vadd.f32 0.4994258, %v1079_v42  ;;  %v1196_v40 = vadd.f32 0.014752088, %v1195_v50  ;;  %v903_v17 = vadd.f32 0.00028619796, %v902_v5 }
 0x27e   :  { %v1066_v14 = vmul.f32 %v1065_v56, %v2351_v36  ;;  %v914_v20 = vadd.f32 0.001143296, %v913_v47  ;;  %v2520_v63 = vmin.f32 %v1260_v58, 16.0  ;;  %v2523_v23 = vmul.f32 0.70710677, %v2509_v30 }
 0x27f   :  { %v1313_v25 = vmul.f32 %v1301_v59, %v2356_v7  ;;  %v1542_v19 = vclamps-f32 %v857_v51, 1.0  ;;  %vm1128_vm3 = vweird.f32 %v2408_v57  ;;  %v1045_v26 = vsub.f32 1.0, %v1044_v4 }
 0x280   :  { %v904_v11 = vmul.f32 %v903_v17, %v2500_v49  ;;  %v977_v18 = vmul.f32 %v976_v9, %v2417_v44  ;;  %v1030_v28 = vmul.f32 %v1029_v1, %v2316_v54  ;;  %v915_v43 = vmul.f32 %v914_v20, %v2500_v49  ;;  %v1599_v54 = vld [vmem:[%s2968_s0 + $0x8] sm:$0xff] }
 0x281   :  { %v1273_v31 = vmul.f32 3.8918573e-05, %v2520_v63  ;;  %v1126_v32 = vmul.f32 %v2462_v24, %v1125_v10  ;;  %v1081_v61 = vmul.f32 %v1080_v16, %v2351_v36  ;;  %v1184_v7 = vmul.f32 %v1183_v60, %v2422_v46 }
 0x282   :  { %v980_v34 = vmul.f32 %v2523_v23, %v2523_v23  ;;  %v1067_v55 = vadd.f32 0.05243302, %v1066_v14  ;;  %v1197_v59 = vmul.f32 %v1196_v40, %v2422_v46  ;;  %v905_v38 = vadd.f32 0.0036580483, %v904_v11 }
 0x283   :  { %v916_v44 = vadd.f32 0.014752088, %v915_v43  ;;  %v2541_v42 = vadd.f32 %v1599_v54, %v1313_v25  ;;  %v1135_v50 = vor.u32 1.1754944e-38, %v1134_v22  ;;  %v1046_v53 = vmul.f32 %v2482_v62, %v1045_v26 }
 0x284   :  { %v1274_v56 = vadd.f32 0.001143296, %v1273_v31  ;;  %v1300_v58 = vadd.f32 1.0, %v1542_v19  ;;  %vm1129_vm4 = vweird.f32 %v2462_v24  ;;  %vm2545_vm5 = vcmp.eq.f32.partialorder %v1132_v35, 8.507059e+37 }
 0x285   :  { %v1031_v1 = vadd.f32 1.1283791, %v1030_v28  ;;  %v917_v4 = vmul.f32 %v916_v44, %v2500_v49  ;;  %v1127_v5 = vadd.f32 %v2462_v24, %v1126_v32  ;;  %v2551_v10 = vadd.f32 1.0, %v1081_v61  ;;  %vm2564_vm6 = vmor %vm1128_vm3, %vm1129_vm4 }
 0x286   :  { %v1185_v60 = vadd.f32 0.0036580483, %v1184_v7  ;;  %v2553_v47 = vmin.f32 %v980_v34, 16.0  ;;  %v1545_v22 = vclamps-f32 %v977_v18, 1.0  ;;  %v1068_v9 = vmul.f32 %v1067_v55, %v2351_v36 }
 0x287   :  { %v1198_v16 = vadd.f32 0.112945676, %v1197_v59  ;;  %v906_v40 = vmul.f32 %v905_v38, %v2500_v49  ;;  %v1047_v35 = vadd.f32 %v2482_v62, %v1046_v53  ;;  %vm1049_vm7 = vweird.f32 %v2482_v62 }
 0x288   :  { %v918_v17 = vadd.f32 0.112945676, %v917_v4  ;;  %v1275_v14 = vmul.f32 %v1274_v56, %v2520_v63  ;;  %vm1048_vm8 = vweird.f32 %v2419_v12  ;;  %v1052_v25 = vand.u32 2147483647, %v2419_v12 }
 0x289   :  { %v1054_v19 = vand.u32 2147483648, %v2419_v12  ;;  %v982_v26 = vmul.f32 2.1237322e-06, %v2553_v47  ;;  %v1131_v11 = vsel %vm2564_vm6, %v2462_v24, %v1127_v5  ;;  %1581 = vrcp.f32 %v2551_v10  ;;  %vm2578_vm9 = vmor %vm1048_vm8, %vm1049_vm7 }
 0x28a   :  { %v1186_v57 = vmul.f32 %v1185_v60, %v2422_v46  ;;  %v919_v18 = vmul.f32 %v918_v17, %v2500_v49  ;;  %v1199_v43 = vmul.f32 %v1198_v16, %v2422_v46  ;;  %v907_v31 = vadd.f32 0.05243302, %v906_v40 }
 0x28b   :  { %v983_v12 = vadd.f32 0.00028619796, %v982_v26  ;;  %v993_v32 = vmul.f32 3.8918573e-05, %v2553_v47  ;;  %v1051_v24 = vsel %vm2578_vm9, %v2482_v62, %v1047_v35  ;;  %v1069_v61 = vadd.f32 0.18741608, %v1068_v9 }
 0x28c   :  { %v920_v7 = vadd.f32 0.4994258, %v919_v18  ;;  %v1276_v34 = vadd.f32 0.014752088, %v1275_v14  ;;  %v1303_v55 = vadd.f32 1.0, %v1545_v22  ;;  %v1055_v59 = vor.u32 1.1754944e-38, %v1054_v19 }
 0x28d   :  { %v984_v38 = vmul.f32 %v983_v12, %v2553_v47  ;;  %v994_v44 = vadd.f32 0.001143296, %v993_v32  ;;  %v1312_v54 = vmul.f32 %v1300_v58, %v2362_v48  ;;  %v1136_v53 = vsel %vm2545_vm5, %v1135_v50, %v1131_v11  ;;  %v724_v58 = vpop.f32.mrf.mxu1  ;;  %v1601_v18 = vld [vmem:[%s2968_s0 + $0x18] sm:$0xff] }
 0x28e   :  { %vm1053_vm10 = vcmp.eq.f32.partialorder %v1052_v25, 8.507059e+37  ;;  %v1187_v56 = vadd.f32 0.05243302, %v1186_v57  ;;  %v1200_v5 = vadd.f32 0.4994258, %v1199_v43  ;;  %v908_v60 = vmul.f32 %v907_v31, %v2500_v49 }
 0x28f   :  { %v1056_v4 = vsel %vm1053_vm10, %v1055_v59, %v1051_v24  ;;  %v921_v62 = vmul.f32 %v920_v7, %v2500_v49  ;;  %v2593_v9 = vpop.eup %1581  ;;  %v1032_v22 = vmul.f32 %v1031_v1, %v2302_v33  ;;  %v1070_v16 = vmul.f32 %v1069_v61, %v2351_v36 }
 0x290   :  { %v1277_v40 = vmul.f32 %v1276_v34, %v2520_v63  ;;  %v995_v48 = vmul.f32 %v994_v44, %v2553_v47  ;;  %v1315_v50 = vmul.f32 %v1303_v55, %v2367_v39  ;;  %v2601_v51 = vmul.f32 %v1136_v53, %v2477_v29  ;;  %v1600_v29 = vld [vmem:[%s2968_s0] sm:$0xff] }
 0x291   :  { %v2603_v35 = vadd.f32 1.0, %v921_v62  ;;  %v985_v17 = vadd.f32 0.0036580483, %v984_v38  ;;  %v1057_v14 = vmul.f32 %v1056_v4, %v1032_v22  ;;  %v1188_v20 = vmul.f32 %v1187_v56, %v2422_v46 }
 0x292   :  { %v1262_v33 = vmul.f32 2.1237322e-06, %v2520_v63  ;;  %v996_v1 = vadd.f32 0.014752088, %v995_v48  ;;  %v1201_v36 = vmul.f32 %v1200_v5, %v2422_v46  ;;  %v909_v25 = vadd.f32 0.18741608, %v908_v60 }
 0x293   :  { %1583 = vrcp.f32 %v2603_v35  ;;  %v2611_v39 = vadd.f32 %v724_v58, %v642_v2  ;;  %v2616_v19 = vadd.f32 %v1600_v29, %v1312_v54  ;;  %v1071_v26 = vadd.f32 1.1283791, %v1070_v16  ;;  %v770_v29 = vpop.f32.mrf.mxu3 }
 0x294   :  { %v1084_v11 = vmul.f32 %v2593_v9, %v2551_v10  ;;  %v1278_v57 = vadd.f32 0.112945676, %v1277_v40  ;;  %v2623_v28 = vadd.f32 %v1601_v18, %v1315_v50  ;;  %v1549_v2 = vclamps-f32 %v2601_v51, 1.0 }
 0x295   :  { %v986_v43 = vmul.f32 %v985_v17, %v2553_v47  ;;  %v997_v31 = vmul.f32 %v996_v1, %v2553_v47  ;;  %v1547_v12 = vclamps-f32 %v1057_v14, 1.0  ;;  %v1189_v32 = vadd.f32 0.18741608, %v1188_v20 }
 0x296   :  { %v2629_v24 = vmul.f32 0.5, %v2441_v45  ;;  %v1263_v61 = vadd.f32 0.00028619796, %v1262_v33  ;;  %v2631_v7 = vadd.f32 1.0, %v1201_v36  ;;  %v910_v34 = vmul.f32 %v909_v25, %v2500_v49 }
 0x297   :  { %v998_v55 = vadd.f32 0.112945676, %v997_v31  ;;  %v2635_v59 = vmul.f32 0.70710677, %v2611_v39  ;;  %v2638_v38 = vmul.f32 %v1071_v26, %v2335_v41  ;;  %v1085_v44 = vsub.f32 1.0, %v1084_v11 }
 0x298   :  { %v1279_v54 = vmul.f32 %v1278_v57, %v2520_v63  ;;  %v2642_v53 = vmul.f32 0.5, %v2509_v30  ;;  %v1092_v56 = vand.u32 2147483647, %v2551_v10  ;;  %v1094_v4 = vand.u32 2147483648, %v2551_v10 }
 0x299   :  { %v1584_v45 = vpop.eup %1583  ;;  %v987_v5 = vadd.f32 0.05243302, %v986_v43  ;;  %v999_v49 = vmul.f32 %v998_v55, %v2553_v47  ;;  %v1305_v60 = vadd.f32 1.0, %v1547_v12  ;;  %v1190_v62 = vmul.f32 %v1189_v32, %v2422_v46 }
 0x29a   :  { %v924_v41 = vmul.f32 %v1584_v45, %v2603_v35  ;;  %v1140_v22 = vmul.f32 %v2635_v59, %v2635_v59  ;;  %vm1089_vm11 = vweird.f32 %v2593_v9  ;;  %1585 = vrcp.f32 %v2631_v7 }
 0x29b   :  { %v911_v30 = vadd.f32 1.1283791, %v910_v34  ;;  %v1264_v16 = vmul.f32 %v1263_v61, %v2520_v63  ;;  %v1000_v40 = vadd.f32 0.4994258, %v999_v49  ;;  %v1086_v48 = vmul.f32 %v2593_v9, %v1085_v44 }
 0x29c   :  { %v925_v58 = vsub.f32 1.0, %v924_v41  ;;  %v1280_v50 = vadd.f32 0.4994258, %v1279_v54  ;;  %v2655_v17 = vmin.f32 %v1140_v22, 16.0  ;;  %vm1088_vm12 = vweird.f32 %v2551_v10 }
 0x29d   :  { %v932_v46 = vand.u32 2147483647, %v2603_v35  ;;  %v934_v14 = vand.u32 2147483648, %v2603_v35  ;;  %v988_v20 = vmul.f32 %v987_v5, %v2553_v47  ;;  %v1001_v33 = vmul.f32 %v1000_v40, %v2553_v47  ;;  %vm2698_vm2 = vmor %vm1088_vm12, %vm1089_vm11 }
 0x29e   :  { %v926_v1 = vmul.f32 %v1584_v45, %v925_v58  ;;  %vm929_vm13 = vweird.f32 %v1584_v45  ;;  %v1142_v36 = vmul.f32 2.1237322e-06, %v2655_v17  ;;  %v1153_v25 = vmul.f32 3.8918573e-05, %v2655_v17 }
 0x29f   :  { %v912_v26 = vmul.f32 %v911_v30, %v2468_v0  ;;  %vm928_vm14 = vweird.f32 %v2603_v35  ;;  %v1265_v11 = vadd.f32 0.0036580483, %v1264_v16  ;;  %v2666_v57 = vadd.f32 1.0, %v1001_v33 }
 0x2a0   :  { %v927_v18 = vadd.f32 %v1584_v45, %v926_v1  ;;  %v1281_v43 = vmul.f32 %v1280_v50, %v2520_v63  ;;  %v1143_v31 = vadd.f32 0.00028619796, %v1142_v36  ;;  %v1154_v12 = vadd.f32 0.001143296, %v1153_v25  ;;  %v2669_v32 = vpop.eup %1585  ;;  %vm930_vm15 = vmor %vm928_vm14, %vm929_vm13 }
 0x2a1   :  { %vm933_vm0 = vcmp.eq.f32.partialorder %v932_v46, 8.507059e+37  ;;  %v935_v61 = vor.u32 1.1754944e-38, %v934_v14  ;;  %1587 = vrcp.f32 %v2666_v57  ;;  %v2674_v0 = vadd.f32 %v770_v29, %v644_v37 }
 0x2a2   :  { %v931_v35 = vsel %vm930_vm15, %v1584_v45, %v927_v18  ;;  %v989_v34 = vadd.f32 0.18741608, %v988_v20  ;;  %v1144_v55 = vmul.f32 %v1143_v31, %v2655_v17  ;;  %v1155_v44 = vmul.f32 %v1154_v12, %v2655_v17 }
 0x2a3   :  { %v1087_v54 = vadd.f32 %v2593_v9, %v1086_v48  ;;  %v1191_v5 = vadd.f32 1.1283791, %v1190_v62  ;;  %v936_v49 = vsel %vm933_vm0, %v935_v61, %v931_v35  ;;  %v1266_v41 = vmul.f32 %v1265_v11, %v2520_v63 }
 0x2a4   :  { %v1204_v22 = vmul.f32 %v2669_v32, %v2631_v7  ;;  %v937_v30 = vmul.f32 %v936_v49, %v912_v26  ;;  %v1145_v16 = vadd.f32 0.0036580483, %v1144_v55  ;;  %v1156_v3 = vadd.f32 0.014752088, %v1155_v44 }
 0x2a5   :  { %vm2682_vm1 = vcmp.eq.f32.partialorder %v1092_v56, 8.507059e+37  ;;  %v1095_v45 = vor.u32 1.1754944e-38, %v1094_v4  ;;  %v2686_v40 = vadd.f32 1.0, %v1281_v43  ;;  %v2689_v58 = vmul.f32 0.70710677, %v2674_v0 }
 0x2a6   :  { %v2692_v62 = vmul.f32 %v1305_v60, %v2379_v13  ;;  %v1544_v56 = vclamps-f32 %v937_v30, 1.0  ;;  %v990_v50 = vmul.f32 %v989_v34, %v2553_v47  ;;  %v1157_v4 = vmul.f32 %v1156_v3, %v2655_v17 }
 0x2a7   :  { %v1588_v46 = vpop.eup %1587  ;;  %v1091_v14 = vsel %vm2698_vm2, %v2593_v9, %v1087_v54  ;;  %v2708_v13 = vmul.f32 %v1191_v5, %v2392_v21  ;;  %v1212_v60 = vand.u32 2147483647, %v2631_v7  ;;  %v1220_v10 = vmul.f32 %v2689_v58, %v2689_v58 }
 0x2a8   :  { %v1205_v20 = vsub.f32 1.0, %v1204_v22  ;;  %v1267_v33 = vadd.f32 0.05243302, %v1266_v41  ;;  %v1004_v1 = vmul.f32 %v1588_v46, %v2666_v57  ;;  %v1146_v47 = vmul.f32 %v1145_v16, %v2655_v17 }
 0x2a9   :  { %v1302_v36 = vadd.f32 1.0, %v1544_v56  ;;  %1589 = vrcp.f32 %v2686_v40  ;;  %v1158_v25 = vadd.f32 0.112945676, %v1157_v4  ;;  %v2716_v29 = vmin.f32 %v1220_v10, 16.0  ;;  %v1602_v56 = vld [vmem:[%s2968_s0 + $0x10] sm:$0xff] }
 0x2aa   :  { %v1096_v21 = vsel %vm2682_vm1, %v1095_v45, %v1091_v14  ;;  %vm1209_vm3 = vweird.f32 %v2669_v32  ;;  %v991_v9 = vadd.f32 1.1283791, %v990_v50  ;;  %v1005_v26 = vsub.f32 1.0, %v1004_v1 }
 0x2ab   :  { %vm1208_vm4 = vweird.f32 %v2631_v7  ;;  %v1012_v11 = vand.u32 2147483647, %v2666_v57  ;;  %v1014_v18 = vand.u32 2147483648, %v2666_v57  ;;  %v1159_v43 = vmul.f32 %v1158_v25, %v2655_v17 }
 0x2ac   :  { %v1222_v31 = vmul.f32 2.1237322e-06, %v2716_v29  ;;  %v1006_v12 = vmul.f32 %v1588_v46, %v1005_v26  ;;  %vm1009_vm5 = vweird.f32 %v1588_v46  ;;  %v1147_v61 = vadd.f32 0.05243302, %v1146_v47  ;;  %vm2759_vm9 = vmor %vm1208_vm4, %vm1209_vm3 }
 0x2ad   :  { %v1233_v35 = vmul.f32 3.8918573e-05, %v2716_v29  ;;  %v1206_v34 = vmul.f32 %v2669_v32, %v1205_v20  ;;  %v1314_v55 = vmul.f32 %v1302_v36, %v2629_v24  ;;  %v1268_v44 = vmul.f32 %v1267_v33, %v2520_v63 }
 0x2ae   :  { %v1160_v54 = vadd.f32 0.4994258, %v1159_v43  ;;  %v1007_v5 = vadd.f32 %v1588_v46, %v1006_v12  ;;  %vm1008_vm7 = vweird.f32 %v2666_v57  ;;  %v1223_v49 = vadd.f32 0.00028619796, %v1222_v31 }
 0x2af   :  { %v1234_v41 = vadd.f32 0.001143296, %v1233_v35  ;;  %v2731_v22 = vpop.eup %1589  ;;  %v992_v30 = vmul.f32 %v991_v9, %v2523_v23  ;;  %vm1010_vm6 = vmor %vm1008_vm7, %vm1009_vm5  ;;  %vm1013_vm8 = vcmp.eq.f32.partialorder %v1012_v11, 8.507059e+37  ;;  %v1015_v16 = vor.u32 1.1754944e-38, %v1014_v18 }
 0x2b0   :  { %v1161_v3 = vmul.f32 %v1160_v54, %v2655_v17  ;;  %v1011_v37 = vsel %vm1010_vm6, %v1588_v46, %v1007_v5  ;;  %v1148_v24 = vmul.f32 %v1147_v61, %v2655_v17  ;;  %v1224_v45 = vmul.f32 %v1223_v49, %v2716_v29 }
 0x2b1   :  { %v1235_v48 = vmul.f32 %v1234_v41, %v2716_v29  ;;  %v1207_v57 = vadd.f32 %v2669_v32, %v1206_v34  ;;  %v2742_v50 = vadd.f32 %v1602_v56, %v1314_v55  ;;  %v1016_v23 = vsel %vm1013_vm8, %v1015_v16, %v1011_v37 }
 0x2b2   :  { %v2744_v4 = vadd.f32 1.0, %v1161_v3  ;;  %v1284_v46 = vmul.f32 %v2731_v22, %v2686_v40  ;;  %v1017_v14 = vmul.f32 %v1016_v23, %v992_v30  ;;  %v1225_v10 = vadd.f32 0.0036580483, %v1224_v45  ;;  %v1604_v45 = vld [vmem:[%s2968_s0 + $0x28] sm:$0xff] }
 0x2b3   :  { %v1236_v20 = vadd.f32 0.014752088, %v1235_v48  ;;  %v2749_v33 = vmul.f32 %v1096_v21, %v2638_v38  ;;  %v1214_v1 = vand.u32 2147483648, %v2631_v7  ;;  %v1350_v47 = vmul.f32 %v2616_v19, %v2616_v19 }
 0x2b4   :  { %1591 = vrcp.f32 %v2744_v4  ;;  %v1269_v25 = vadd.f32 0.18741608, %v1268_v44  ;;  %v1546_v9 = vclamps-f32 %v1017_v14, 1.0  ;;  %v1149_v26 = vadd.f32 0.18741608, %v1148_v24 }
 0x2b5   :  { %v1237_v38 = vmul.f32 %v1236_v20, %v2716_v29  ;;  %v1211_v21 = vsel %vm2759_vm9, %v2669_v32, %v1207_v57  ;;  %v1336_v11 = vadd.f32 %v2541_v42, %v2616_v19  ;;  %v1351_v18 = vmul.f32 %v2541_v42, %v2541_v42 }
 0x2b6   :  { %v1352_v43 = vmul.f32 %v2742_v50, %v2742_v50  ;;  %v1285_v31 = vsub.f32 1.0, %v1284_v46  ;;  %v1304_v12 = vadd.f32 1.0, %v1546_v9  ;;  %v1226_v61 = vmul.f32 %v1225_v10, %v2716_v29 }
 0x2b7   :  { %v1238_v35 = vadd.f32 0.112945676, %v1237_v38  ;;  %vm1213_vm10 = vcmp.eq.f32.partialorder %v1212_v60, 8.507059e+37  ;;  %v1215_v34 = vor.u32 1.1754944e-38, %v1214_v1  ;;  %v1337_v32 = vadd.f32 %v1336_v11, %v2742_v50 }
 0x2b8   :  { %v1362_v55 = vadd.f32 %v1351_v18, %v1350_v47  ;;  %v1548_v44 = vclamps-f32 %v2749_v33, 1.0  ;;  %v1316_v54 = vmul.f32 %v1304_v12, %v2642_v53  ;;  %v1150_v5 = vmul.f32 %v1149_v26, %v2655_v17  ;;  %v1603_v53 = vld [vmem:[%s2968_s0 + $0x20] sm:$0xff] }
 0x2b9   :  { %v1239_v49 = vmul.f32 %v1238_v35, %v2716_v29  ;;  %v1216_v30 = vsel %vm1213_vm10, %v1215_v34, %v1211_v21  ;;  %v1270_v16 = vmul.f32 %v1269_v25, %v2520_v63  ;;  %vm1289_vm11 = vweird.f32 %v2731_v22 }
 0x2ba   :  { %v1592_v41 = vpop.eup %1591  ;;  %v1363_v7 = vadd.f32 %v1362_v55, %v1352_v43  ;;  %v1286_v60 = vmul.f32 %v2731_v22, %v1285_v31  ;;  %v1227_v37 = vadd.f32 0.05243302, %v1226_v61  ;;  %v2788_v17 = vadd.f32 %v1603_v53, %v1316_v54 }
 0x2bb   :  { %v1164_v3 = vmul.f32 %v1592_v41, %v2744_v4  ;;  %v1240_v24 = vadd.f32 0.4994258, %v1239_v49  ;;  %v2794_v63 = vadd.f32 %v1604_v45, %v2692_v62  ;;  %v1338_v48 = vadd.f32 %v1337_v32, %v2623_v28 }
 0x2bc   :  { %v1353_v57 = vmul.f32 %v2623_v28, %v2623_v28  ;;  %v1151_v56 = vadd.f32 1.1283791, %v1150_v5  ;;  %v1172_v46 = vand.u32 2147483647, %v2744_v4  ;;  %v1174_v10 = vand.u32 2147483648, %v2744_v4 }
 0x2bd   :  { %v1165_v23 = vsub.f32 1.0, %v1164_v3  ;;  %v1241_v14 = vmul.f32 %v1240_v24, %v2716_v29  ;;  %v1339_v20 = vadd.f32 %v1338_v48, %v2788_v17  ;;  %v1354_v33 = vmul.f32 %v2788_v17, %v2788_v17 }
 0x2be   :  { %v1364_v62 = vadd.f32 %v1363_v7, %v1353_v57  ;;  %vm1169_vm12 = vweird.f32 %v1592_v41  ;;  %v1228_v47 = vmul.f32 %v1227_v37, %v2716_v29  ;;  %v1287_v25 = vadd.f32 %v2731_v22, %v1286_v60 }
 0x2bf   :  { %v1166_v1 = vmul.f32 %v1592_v41, %v1165_v23  ;;  %v2806_v36 = vadd.f32 1.0, %v1241_v14  ;;  %v1340_v9 = vadd.f32 %v1339_v20, %v2794_v63  ;;  %v1355_v26 = vmul.f32 %v2794_v63, %v2794_v63 }
 0x2c0   :  { %v1365_v38 = vadd.f32 %v1364_v62, %v1354_v33  ;;  %v1294_v21 = vand.u32 2147483648, %v2686_v40  ;;  %vm1168_vm13 = vweird.f32 %v2744_v4  ;;  %vm1288_vm14 = vweird.f32 %v2686_v40  ;;  %v1607_v62 = vld [vmem:[%s2968_s0 + $0x40] sm:$0xff] }
 0x2c1   :  { %v1167_v11 = vadd.f32 %v1592_v41, %v1166_v1  ;;  %1593 = vrcp.f32 %v2806_v36  ;;  %v1292_v18 = vand.u32 2147483647, %v2686_v40  ;;  %vm1170_vm15 = vmor %vm1168_vm13, %vm1169_vm12  ;;  %v1175_v43 = vor.u32 1.1754944e-38, %v1174_v10  ;;  %1341 = vadd.xlane.f32.xlu0 %v1340_v9 }
 0x2c2   :  { %v1366_v31 = vadd.f32 %v1365_v38, %v1355_v26  ;;  %vm2819_vm0 = vmor %vm1288_vm14, %vm1289_vm11  ;;  %v1152_v61 = vmul.f32 %v1151_v56, %v2635_v59  ;;  %vm1173_vm1 = vcmp.eq.f32.partialorder %v1172_v46, 8.507059e+37  ;;  %v1229_v4 = vadd.f32 0.18741608, %v1228_v47 }
 0x2c3   :  { %v1171_v35 = vsel %vm1170_vm15, %v1592_v41, %v1167_v11  ;;  %v1271_v34 = vadd.f32 1.1283791, %v1270_v16  ;;  %v1291_v40 = vsel %vm2819_vm0, %v2731_v22, %v1287_v25  ;;  %v1217_v55 = vmul.f32 %v1216_v30, %v2708_v13 }
 0x2c4   :  { %v1176_v32 = vsel %vm1173_vm1, %v1175_v43, %v1171_v35  ;;  %1367 = vadd.xlane.f32.xlu1 %v1366_v31  ;;  %v1295_v54 = vor.u32 1.1754944e-38, %v1294_v21  ;;  %v1306_v49 = vadd.f32 1.0, %v1548_v44  ;;  %vm1293_vm2 = vcmp.eq.f32.partialorder %v1292_v18, 8.507059e+37  ;;  %v1608_v31 = vld [vmem:[%s2968_s0 + $0x48] sm:$0xff] }
 0x2c5   :  { %v1177_v5 = vmul.f32 %v1176_v32, %v1152_v61  ;;  %v1307_v59 = vadd.f32 1.0, %v1549_v2  ;;  %v1230_v16 = vmul.f32 %v1229_v4, %v2716_v29  ;;  %v802_v3 = vmul.f32 0.5, %v2322_v8 }
 0x2c6   :  { %v1296_v41 = vsel %vm1293_vm2, %v1295_v54, %v1291_v40  ;;  %v1272_v22 = vmul.f32 %v1271_v34, %v2473_v27  ;;  %v803_v13 = vmul.f32 0.5, %v2264_v52  ;;  %v1551_v30 = vclamps-f32 %v1217_v55, 1.0  ;;  %v1605_v52 = vld [vmem:[%s2968_s0 + $0x30] sm:$0xff] }
 0x2c7   :  { %v1594_v7 = vpop.eup %1593  ;;  %v1550_v60 = vclamps-f32 %v1177_v5, 1.0  ;;  %v1318_v44 = vmul.f32 %v1306_v49, %v802_v3  ;;  %v804_v45 = vmul.f32 0.5, %v2611_v39  ;;  %v1231_v48 = vadd.f32 1.1283791, %v1230_v16  ;;  %v1606_v39 = vld [vmem:[%s2968_s0 + $0x38] sm:$0xff]  ;;  %v1609_v55 = vld [vmem:[%s2968_s0 + $0x50] sm:$0xff] }
 0x2c8   :  { %v1244_v37 = vmul.f32 %v1594_v7, %v2806_v36  ;;  %v1297_v53 = vmul.f32 %v1296_v41, %v1272_v22  ;;  %v1319_v2 = vmul.f32 %v1307_v59, %v803_v13  ;;  %v1254_v57 = vand.u32 2147483648, %v2806_v36  ;;  %v1610_v5 = vld [vmem:[%s2968_s0 + $0x58] sm:$0xff] }
 0x2c9   :  { %v1308_v24 = vadd.f32 1.0, %v1550_v60  ;;  %vm1249_vm3 = vweird.f32 %v1594_v7  ;;  %v1252_v8 = vand.u32 2147483647, %v2806_v36  ;;  %v1309_v27 = vadd.f32 1.0, %v1551_v30 }
 0x2ca   :  { %v1245_v51 = vsub.f32 1.0, %v1244_v37  ;;  %v2841_v23 = vadd.f32 %v1605_v52, %v1318_v44  ;;  %v1553_v46 = vclamps-f32 %v1297_v53, 1.0  ;;  %vm1248_vm4 = vweird.f32 %v2806_v36 }
 0x2cb   :  { %v1320_v29 = vmul.f32 %v1308_v24, %v804_v45  ;;  %v2847_v10 = vadd.f32 %v1606_v39, %v1319_v2  ;;  %v805_v20 = vmul.f32 0.5, %v2372_v6  ;;  %vm1250_vm5 = vmor %vm1248_vm4, %vm1249_vm3  ;;  %v1255_v33 = vor.u32 1.1754944e-38, %v1254_v57 }
 0x2cc   :  { %v1246_v56 = vmul.f32 %v1594_v7, %v1245_v51  ;;  %v1232_v47 = vmul.f32 %v1231_v48, %v2689_v58  ;;  %vm1253_vm7 = vcmp.eq.f32.partialorder %v1252_v8, 8.507059e+37  ;;  %v1356_v26 = vmul.f32 %v2841_v23, %v2841_v23  ;;  %v2899_v8 = vld [vmem:[%s2976_s8] sm:$0x3f] }
 0x2cd   :  { %v2853_v1 = vadd.f32 %v1607_v62, %v1320_v29  ;;  %v1321_v36 = vmul.f32 %v1309_v27, %v805_v20  ;;  %v1311_v38 = vadd.f32 1.0, %v1553_v46  ;;  %v807_v6 = vmul.f32 0.5, %v2445_v15  ;;  %v2894_v29 = vld [vmem:[%s2975_s7] sm:$0x3f]  ;;  %s1637_s7 = smov [#allocation2]  }
 0x2ce   :  { %v1247_v14 = vadd.f32 %v1594_v7, %v1246_v56  ;;  %v1357_v11 = vmul.f32 %v2847_v10, %v2847_v10  ;;  %v1343_v43 = vadd.f32 %v2847_v10, %v2841_v23  ;;  %v806_v61 = vmul.f32 0.5, %v2674_v0  ;;  %s1498_s8 = sshll.u32 %s1637_s7, 4  ;;  %s1499_s8 = int_to_ptr.vmem [resolvable:$true] %s1498_s8 }
 0x2cf   :  { %v1358_v58 = vmul.f32 %v2853_v1, %v2853_v1  ;;  %v2868_v12 = vadd.f32 %v1608_v31, %v1321_v36  ;;  %v1323_v35 = vmul.f32 %v1311_v38, %v807_v6  ;;  %v1432_v27 = vperm.slane %v2894_v29, 0 }
 0x2d0   :  { %v1251_v25 = vsel %vm1250_vm5, %v1594_v7, %v1247_v14  ;;  %v1344_v4 = vadd.f32 %v1343_v43, %v2853_v1  ;;  %v1369_v34 = vadd.f32 %v1357_v11, %v1356_v26  ;;  %v1433_v52 = vperm.slane %v2894_v29, 1 }
 0x2d1   :  { %v1256_v9 = vsel %vm1253_vm7, %v1255_v33, %v1251_v25  ;;  %v2880_v49 = vadd.f32 %v1610_v5, %v1323_v35  ;;  %v1359_v7 = vmul.f32 %v2868_v12, %v2868_v12  ;;  %v1434_v14 = vperm.slane %v2894_v29, 2 }
 0x2d2   :  { %v1257_v21 = vmul.f32 %v1256_v9, %v1232_v47  ;;  %v1370_v32 = vadd.f32 %v1369_v34, %v1358_v58  ;;  %v1345_v0 = vadd.f32 %v1344_v4, %v2868_v12  ;;  %v1435_v39 = vperm.slane %v2894_v29, 3 }
 0x2d3   :  { %v1361_v3 = vmul.f32 %v2880_v49, %v2880_v49  ;;  %v1436_v20 = vperm.slane %v2894_v29, 4  ;;  %v1437_v33 = vperm.slane %v2894_v29, 5  ;;  %v1458_v62 = vperm.slane %v2899_v8, 0 }
 0x2d4   :  { %v1552_v18 = vclamps-f32 %v1257_v21, 1.0  ;;  %v1371_v60 = vadd.f32 %v1370_v32, %v1359_v7  ;;  %v1459_v47 = vperm.slane %v2899_v8, 1  ;;  %v1460_v21 = vperm.slane %v2899_v8, 2 }
 0x2d5   :  { %v1461_v35 = vperm.slane %v2899_v8, 3  ;;  %v1463_v4 = vperm.slane %v2899_v8, 5 }
 0x2d6   :  { %v1310_v15 = vadd.f32 1.0, %v1552_v18 }
 0x2d8   :  { %v1322_v40 = vmul.f32 %v1310_v15, %v806_v61 }
 0x2da   :  { %v2875_v54 = vadd.f32 %v1609_v55, %v1322_v40 }
 0x2dc   :  { %v1346_v59 = vadd.f32 %v1345_v0, %v2875_v54  ;;  %v1360_v41 = vmul.f32 %v2875_v54, %v2875_v54 }
 0x2de   :  { %v1347_v16 = vadd.f32 %v1346_v59, %v2880_v49  ;;  %v1372_v22 = vadd.f32 %v1371_v60, %v1360_v41 }
 0x2e0   :  { %1348 = vadd.xlane.f32.xlu0 %v1347_v16  ;;  %v1373_v37 = vadd.f32 %v1372_v22, %v1361_v3 }
 0x2e2   :  { %1374 = vadd.xlane.f32.xlu1 %v1373_v37 }
 0x334   :  { %v1342_v13 = vpop.xlane.xlu0 %1341 }
 0x335   :  { %v1376_v30 = vmul.f32 0.0013020834, %v1342_v13 }
 0x337   :  { %v1368_v24 = vpop.xlane.xlu1 %1367  ;;  %v1380_v53 = vmul.f32 %v1376_v30, %v1376_v30  ;;  %v1406_v36 = vsub.f32 %v2616_v19, %v1376_v30  ;;  %v1407_v9 = vsub.f32 %v2541_v42, %v1376_v30  ;;  %v1408_v26 = vsub.f32 %v2742_v50, %v1376_v30 }
 0x338   :  { %v1378_v44 = vmul.f32 0.0013020834, %v1368_v24  ;;  %v1409_v38 = vsub.f32 %v2623_v28, %v1376_v30  ;;  %v1410_v11 = vsub.f32 %v2788_v17, %v1376_v30  ;;  %v1411_v18 = vsub.f32 %v2794_v63, %v1376_v30 }
 0x339   :  { %v1462_v19 = vperm.slane %v2899_v8, 4 }
 0x33a   :  { %v1382_v45 = vsub.f32 %v1378_v44, %v1380_v53 }
 0x33c   :  { %v1384_v51 = vadd.f32 1e-05, %v1382_v45 }
 0x33e   :  { %1595 = vrsqrt.f32 %v1384_v51  ;;  %vm1392_vm8 = vweird.f32 %v1384_v51 }
 0x344   :  { %v1596_v2 = vpop.eup %1595 }
 0x345   :  { %v1387_v48 = vmul.f32 %v1596_v2, %v1384_v51  ;;  %vm1393_vm6 = vweird.f32 %v1596_v2 }
 0x346   :  { %vm1394_vm9 = vmor %vm1392_vm8, %vm1393_vm6 }
 0x347   :  { %v1388_v57 = vmul.f32 %v1596_v2, %v1387_v48 }
 0x349   :  { %v1389_v56 = vmul.f32 0.5, %v1388_v57 }
 0x34b   :  { %v1390_v46 = vsub.f32 1.5, %v1389_v56 }
 0x34d   :  { %v1391_v25 = vmul.f32 %v1596_v2, %v1390_v46 }
 0x34f   :  { %v1395_v6 = vsel %vm1394_vm9, %v1596_v2, %v1391_v25 }
 0x350   :  { %v1418_v43 = vmul.f32 %v1406_v36, %v1395_v6  ;;  %v1419_v58 = vmul.f32 %v1407_v9, %v1395_v6  ;;  %v1420_v31 = vmul.f32 %v1408_v26, %v1395_v6  ;;  %v1421_v61 = vmul.f32 %v1409_v38, %v1395_v6 }
 0x351   :  { %v1422_v42 = vmul.f32 %v1410_v11, %v1395_v6  ;;  %v1423_v15 = vmul.f32 %v1411_v18, %v1395_v6 }
 0x352   :  { %v1444_v28 = vmul.f32 %v1432_v27, %v1418_v43  ;;  %v1445_v50 = vmul.f32 %v1433_v52, %v1419_v58  ;;  %v1446_v17 = vmul.f32 %v1434_v14, %v1420_v31  ;;  %v1447_v63 = vmul.f32 %v1435_v39, %v1421_v61 }
 0x353   :  { %v1448_v34 = vmul.f32 %v1436_v20, %v1422_v42  ;;  %v1449_v40 = vmul.f32 %v1437_v33, %v1423_v15  ;;  %v1349_v32 = vpop.xlane.xlu0 %1348 }
 0x354   :  { %v1470_v55 = vadd.f32 %v1458_v62, %v1444_v28  ;;  %v1471_v5 = vadd.f32 %v1459_v47, %v1445_v50  ;;  %v1472_v0 = vadd.f32 %v1460_v21, %v1446_v17  ;;  %v1473_v7 = vadd.f32 %v1461_v35, %v1447_v63 }
 0x355   :  { %v1377_v59 = vmul.f32 0.0013020834, %v1349_v32  ;;  %v1375_v41 = vpop.xlane.xlu1 %1374  ;;  %v1474_v60 = vadd.f32 %v1462_v19, %v1448_v34  ;;  %v1475_v3 = vadd.f32 %v1463_v4, %v1449_v40 }
 0x356   :  { %1482 = vst [vmem:[#allocation2] sm:$0xff] %v1470_v55  ;;  %v1379_v16 = vmul.f32 0.0013020834, %v1375_v41 }
 0x357   :  { %1483 = vst [vmem:[#allocation2 + $0x8] sm:$0xff] %v1471_v5  ;;  %v1381_v22 = vmul.f32 %v1377_v59, %v1377_v59  ;;  %v1412_v2 = vsub.f32 %v2841_v23, %v1377_v59  ;;  %v1413_v48 = vsub.f32 %v2847_v10, %v1377_v59  ;;  %v1414_v57 = vsub.f32 %v2853_v1, %v1377_v59 }
 0x358   :  { %1484 = vst [vmem:[#allocation2 + $0x10] sm:$0xff] %v1472_v0  ;;  %v1415_v56 = vsub.f32 %v2868_v12, %v1377_v59  ;;  %v1416_v25 = vsub.f32 %v2875_v54, %v1377_v59  ;;  %v1417_v36 = vsub.f32 %v2880_v49, %v1377_v59 }
 0x359   :  { %1485 = vst [vmem:[#allocation2 + $0x18] sm:$0xff] %v1473_v7  ;;  %v1383_v37 = vsub.f32 %v1379_v16, %v1381_v22 }
 0x35a   :  { %1486 = vst [vmem:[#allocation2 + $0x20] sm:$0xff] %v1474_v60 }
 0x35b   :  { %1487 = vst [vmem:[#allocation2 + $0x28] sm:$0xff] %v1475_v3  ;;  %v1385_v13 = vadd.f32 1e-05, %v1383_v37 }
 0x35d   :  { %1597 = vrsqrt.f32 %v1385_v13  ;;  %vm1402_vm11 = vweird.f32 %v1385_v13 }
 0x363   :  { %v1598_v30 = vpop.eup %1597 }
 0x364   :  { %v1397_v24 = vmul.f32 %v1598_v30, %v1385_v13  ;;  %vm1403_vm10 = vweird.f32 %v1598_v30 }
 0x365   :  { %vm1404_vm12 = vmor %vm1402_vm11, %vm1403_vm10 }
 0x366   :  { %v1398_v44 = vmul.f32 %v1598_v30, %v1397_v24 }
 0x368   :  { %v1399_v53 = vmul.f32 0.5, %v1398_v44 }
 0x36a   :  { %v1400_v45 = vsub.f32 1.5, %v1399_v53 }
 0x36c   :  { %v1401_v51 = vmul.f32 %v1598_v30, %v1400_v45 }
 0x36e   :  { %v1405_v46 = vsel %vm1404_vm12, %v1598_v30, %v1401_v51 }
 0x36f   :  { %v1424_v9 = vmul.f32 %v1412_v2, %v1405_v46  ;;  %v1425_v26 = vmul.f32 %v1413_v48, %v1405_v46  ;;  %v1426_v38 = vmul.f32 %v1414_v57, %v1405_v46  ;;  %v1427_v6 = vmul.f32 %v1415_v56, %v1405_v46 }
 0x370   :  { %v1428_v11 = vmul.f32 %v1416_v25, %v1405_v46  ;;  %v1429_v18 = vmul.f32 %v1417_v36, %v1405_v46 }
 0x371   :  { %v1450_v23 = vmul.f32 %v1432_v27, %v1424_v9  ;;  %v1451_v10 = vmul.f32 %v1433_v52, %v1425_v26  ;;  %v1452_v1 = vmul.f32 %v1434_v14, %v1426_v38  ;;  %v1453_v12 = vmul.f32 %v1435_v39, %v1427_v6 }
 0x372   :  { %v1454_v54 = vmul.f32 %v1436_v20, %v1428_v11  ;;  %v1455_v49 = vmul.f32 %v1437_v33, %v1429_v18 }
 0x373   :  { %v1476_v43 = vadd.f32 %v1458_v62, %v1450_v23  ;;  %v1477_v27 = vadd.f32 %v1459_v47, %v1451_v10  ;;  %v1478_v52 = vadd.f32 %v1460_v21, %v1452_v1  ;;  %v1479_v58 = vadd.f32 %v1461_v35, %v1453_v12 }
 0x374   :  { %v1480_v29 = vadd.f32 %v1462_v19, %v1454_v54  ;;  %v1481_v14 = vadd.f32 %v1463_v4, %v1455_v49 }
 0x375   :  { %1488 = vst [vmem:[#allocation2 + $0x30] sm:$0xff] %v1476_v43 }
 0x376   :  { %1489 = vst [vmem:[#allocation2 + $0x38] sm:$0xff] %v1477_v27 }
 0x377   :  { %1490 = vst [vmem:[#allocation2 + $0x40] sm:$0xff] %v1478_v52 }
 0x378   :  { %1491 = vst [vmem:[#allocation2 + $0x48] sm:$0xff] %v1479_v58 }
 0x379   :  { %1492 = vst [vmem:[#allocation2 + $0x50] sm:$0xff] %v1480_v29 }
 0x37a   :  { %1493 = vst [vmem:[#allocation2 + $0x58] sm:$0xff] %v1481_v14 }
 0x37b   :  { %1506 = dma.vmem_to_hbm [thread:$0]  %s1499_s8, 1536, %s1501_s4, [#allocation3], %s1638_s17, %s1638_s17, %s1639_s18  }
 0x37c   :  { %1635 = dma.done.wait [#allocation3], 1536  }
 0x37d   :  { %1636 = vsyncadd [#allocation3], 4294965760 }
 0x37e   :  { %1511 = vsyncpa [#allocation3], 1 }

</bundles_post_ra>
